<compile_context>
chip_gen: v5e
topology: v5e:2x2
jax: 0.10.0
libtpu: 0.0.40
codegen_flags: <defaults>
</compile_context>

<pallas_src>
import functools

import jax
import jax.numpy as jnp
import numpy as np
from jax import lax
from jax.experimental import pallas as pl
from jax.experimental.pallas import tpu as pltpu

BN_EPS = 1e-5


def _upsample_block_kernel(x_ref, wm_ref, pv_ref, out_ref, *, n_img, h2, cout):
    """Single-invocation kernel; all tensors resident in VMEM (small renderer maps)."""
    tot_rows, lin = x_ref.shape        # tot_rows = N*(H2+2) merged padded rows, lin = W*Cin
    r_rows, lm = out_ref.shape         # r_rows = tot_rows - 2 conv rows (incl. junk), lm = W2*Cout
    assert tot_rows == r_rows + 2
    hp2 = h2 + 2
    w2 = lm // cout
    inv_count = 1.0 / float(n_img * h2 * w2)
    k1, k2 = 3 * lin, 3 * lm

    # ---- unpack the single packed per-channel parameter operand ----
    pv = pv_ref[...]                               # (8, lm) f32
    bias1 = pv[0:1, :]                             # conv1 bias, lane-expanded
    bias3 = pv[1:2, :]                             # conv3 bias, lane-expanded
    g1, be1 = pv[2:3, :cout], pv[3:4, :cout]       # BN1 affine, (1, Cout)
    g2, be2 = pv[4:5, :cout], pv[5:6, :cout]       # BN2 affine, (1, Cout)

    # ---- valid-row mask over the merged-row slab: rows with (r mod Hp2) >= H2 are
    #      inter-image junk (excluded from BN stats, zeroed so they become the next
    #      conv's inter-image zero-padding rows) ----
    row_id = lax.broadcasted_iota(jnp.int32, (r_rows, 1), 0)
    vmask = (row_id % hp2 < h2).astype(jnp.float32)          # (R, 1)

    def lane_channel_sum(v):
        """(M, lm) -> (M, cout): exact f32 per-channel reduction over the W2 lane groups."""
        acc = v[:, 0:cout]
        for wcol in range(1, w2):
            acc = acc + v[:, wcol * cout:(wcol + 1) * cout]
        return acc

    def lane_tile(v):
        """(M, cout) -> (M, lm): repeat along lanes W2 times (doubling concats, exact)."""
        out, reps = v, 1
        while reps * 2 <= w2:
            out = jnp.concatenate([out, out], axis=1)
            reps *= 2
        if reps < w2:
            out = jnp.concatenate([out, out[:, :(w2 - reps) * cout]], axis=1)
        return out

    def conv(p_slab, w_rhs):
        """3x3 SAME conv over the H-padded slab as ONE MXU matmul: the 3 row-shifted
        windows are lane-concatenated into an (R, 3L) bf16 LHS against the row-stacked
        lane matrices (f32 accumulation)."""
        lhs = jnp.concatenate(
            [p_slab[0:r_rows], p_slab[1:1 + r_rows], p_slab[2:2 + r_rows]], axis=1)
        return jnp.dot(lhs, w_rhs, preferred_element_type=jnp.float32)

    def bn_relu(y, g, be):
        """Training-mode BatchNorm2d (batch stats, biased var, eps=1e-5) + ReLU.
        Junk rows are masked out of the statistics and zeroed in the result."""
        ym = y * vmask
        sums = jnp.concatenate([jnp.sum(ym, axis=0, keepdims=True),
                                jnp.sum(ym * ym, axis=0, keepdims=True)], axis=0)  # (2, lm)
        sums_c = lane_channel_sum(sums)                       # (2, Cout), exact f32
        mean = sums_c[0:1] * inv_count
        # TODO(synk): single-pass E[x^2]-E[x]^2 can cancel when |mean| >> std; switch to a
        # two-pass / Welford variant at production scale.
        var = sums_c[1:2] * inv_count - mean * mean
        scale_c = g * lax.rsqrt(var + BN_EPS)                 # (1, Cout)
        shift_c = be - mean * scale_c
        ss = lane_tile(jnp.concatenate([scale_c, shift_c], axis=0))   # (2, lm)
        h = jnp.maximum(y * ss[0:1] + ss[1:2], 0.0) * vmask
        return h.astype(jnp.bfloat16)

    zrow = jnp.zeros((1, lm), jnp.bfloat16)

    # conv1 + bias + ReLU (this result is also the identity skip of the ResBlock).
    # The column 2x duplication and W padding live in the conv1 lane matrix; the row 2x
    # duplication and H padding were folded into the packed input slab.
    y1 = jnp.maximum(conv(x_ref[...], wm_ref[0:k1, :]) + bias1, 0.0)      # (R, lm) f32

    # ResBlock body: BN -> ReLU -> conv2 (bias cancelled by BN2) -> BN -> ReLU -> conv3.
    q1 = jnp.concatenate([zrow, bn_relu(y1, g1, be1), zrow], axis=0)      # (R+2, lm) bf16
    y2 = conv(q1, wm_ref[k1:k1 + k2, :])
    q2 = jnp.concatenate([zrow, bn_relu(y2, g2, be2), zrow], axis=0)
    y3 = conv(q2, wm_ref[k1 + k2:k1 + 2 * k2, :]) + bias3

    # identity skip + block: one lane-dense (R, 128) f32 store (junk rows stripped by caller)
    out_ref[...] = y1 + y3


def _lane_conv_mats(w, in_cols, out_cols, col_up):
    """Fold a 3x3 conv's dx taps (+ SAME zero pad in W, + nearest-`col_up` column
    upsampling of the input) into 3 lane matrices, one per kernel row dy.

    w: (3, 3, ci, co).  Returns (3, in_cols*ci, out_cols*co) float32 with
       B[dy, wi*ci + i, wo*co + o] = sum over dx of w[dy, dx, i, o] for every output
       column wo whose tap column (wo + dx - 1) is in range and maps to input column wi.
    """
    w_np = np.asarray(w, np.float32)
    _, _, ci, co = w_np.shape
    mats = np.zeros((3, in_cols * ci, out_cols * co), np.float32)
    for dy in range(3):
        for wo in range(out_cols):
            for dx in range(3):
                u = wo + dx - 1                      # tap column at output resolution
                if u < 0 or u >= out_cols:
                    continue                         # SAME zero padding in W
                wi = u // col_up                     # input column supplying that tap
                mats[dy, wi * ci:(wi + 1) * ci, wo * co:(wo + 1) * co] += w_np[dy, dx]
    return mats


def upsample_block_apply(x_nchw, params, scale_factor=2):
    """UpsampleBlock forward. x_nchw: (N, Cin, H, W) f32 -> (N, Cout, 2H, 2W) f32."""
    assert scale_factor == 2, "lane matrices below are specialized to nearest-2x"
    w1, b1, g1, be1, w2, b2, g2, be2, w3, b3 = params
    del b2  # exactly cancelled by the following training-mode BatchNorm mean subtraction
    N, Cin, H, W = x_nchw.shape
    Cout = w1.shape[-1]
    H2, W2 = 2 * H, 2 * W
    Hp2 = H2 + 2
    Lin, Lm = W * Cin, W2 * Cout
    R = N * Hp2 - 2

    # Layout plumbing (one tiny fused XLA op): NCHW -> (N, H, W*Cin) lane packing, nearest
    # row duplication, 1-row zero padding per image, merged into a 2D bf16 slab.  The
    # column duplication and W padding are folded into the conv1 lane matrices instead.
    x_pack = jnp.transpose(x_nchw, (0, 2, 3, 1)).reshape(N, H, Lin)
    x_slab = jnp.pad(jnp.repeat(x_pack, 2, axis=1), ((0, 0), (1, 1), (0, 0)))
    x_slab = x_slab.reshape(N * Hp2, Lin).astype(jnp.bfloat16)

    # All three convs' lane matrices, fused over the 3 kernel rows (K = 3*L) and stacked
    # into ONE bf16 operand (sublane-tile-aligned slices inside the kernel).
    b1m = _lane_conv_mats(w1, W, W2, 2).reshape(3 * Lin, Lm)    # col-2x upsample folded in
    b2m = _lane_conv_mats(w2, W2, W2, 1).reshape(3 * Lm, Lm)
    b3m = _lane_conv_mats(w3, W2, W2, 1).reshape(3 * Lm, Lm)
    wmats = jnp.asarray(np.concatenate([b1m, b2m, b3m], axis=0), jnp.bfloat16)

    # All per-channel parameters packed into ONE small f32 operand (single DMA).
    pvec_np = np.zeros((8, Lm), np.float32)
    pvec_np[0] = np.tile(np.asarray(b1, np.float32), W2)
    pvec_np[1] = np.tile(np.asarray(b3, np.float32), W2)
    pvec_np[2, :Cout] = np.asarray(g1, np.float32)
    pvec_np[3, :Cout] = np.asarray(be1, np.float32)
    pvec_np[4, :Cout] = np.asarray(g2, np.float32)
    pvec_np[5, :Cout] = np.asarray(be2, np.float32)
    pvec = jnp.asarray(pvec_np)

    # TODO(synk): at production sizes, add a grid over N / H2-row bands (1-row halo) with
    # dimension_semantics=("parallel",) so v7x's two TensorCores are used, and tile W
    # (banded lane matrices) or revert to per-tap K=C matmuls once W*C grows past a few
    # hundred — the dense lane matrix is O(W^2*C^2) in VMEM and inflates MXU FLOPs ~W/3x.
    # This single-invocation kernel targets small renderer maps and fits VMEM everywhere.
    kernel = functools.partial(_upsample_block_kernel, n_img=N, h2=H2, cout=Cout)
    out2d = pl.pallas_call(
        kernel,
        out_shape=jax.ShapeDtypeStruct((R, Lm), jnp.float32),
        in_specs=[pl.BlockSpec(memory_space=pltpu.MemorySpace.VMEM)] * 3,
        out_specs=pl.BlockSpec(memory_space=pltpu.MemorySpace.VMEM),
    )(x_slab, wmats, pvec)

    # Strip the (N-1)*2 inter-image junk rows, unpack lanes, back to NCHW (layout plumbing).
    out_imgs = jnp.stack([out2d[n * Hp2:n * Hp2 + H2] for n in range(N)], axis=0)
    return jnp.transpose(out_imgs.reshape(N, H2, W2, Cout), (0, 3, 1, 2))


def _ref_forward(x_nchw, params, scale_factor=2):
    """Pure-JAX f32 reference (module semantics, lax.conv) for the correctness check."""
    w1, b1, g1, be1, w2, b2, g2, be2, w3, b3 = params
    x = jnp.transpose(x_nchw, (0, 2, 3, 1))
    x = jnp.repeat(jnp.repeat(x, scale_factor, axis=1), scale_factor, axis=2)

    def conv(x, w, b):
        y = lax.conv_general_dilated(x, w, (1, 1), 'SAME',
                                     dimension_numbers=('NHWC', 'HWIO', 'NHWC'))
        return y + b

    def bn_relu(y, g, be):
        mean = jnp.mean(y, axis=(0, 1, 2), keepdims=True)
        var = jnp.mean((y - mean) ** 2, axis=(0, 1, 2), keepdims=True)
        return jnp.maximum((y - mean) * lax.rsqrt(var + BN_EPS) * g + be, 0.0)

    y1 = jnp.maximum(conv(x, w1, b1), 0.0)
    h1 = bn_relu(y1, g1, be1)
    y2 = conv(h1, w2, b2)
    h2 = bn_relu(y2, g2, be2)
    y3 = conv(h2, w3, b3)
    return jnp.transpose(y1 + y3, (0, 3, 1, 2))


def _init_params(key, cin, cout):
    ks = jax.random.split(key, 10)

    def conv_w(k, ci, co):
        return (jax.random.normal(k, (3, 3, ci, co), jnp.float32)
                / jnp.sqrt(jnp.float32(9 * ci)))

    w1 = conv_w(ks[0], cin, cout)
    b1 = 0.1 * jax.random.normal(ks[1], (cout,), jnp.float32)
    g1 = 1.0 + 0.1 * jax.random.normal(ks[2], (cout,), jnp.float32)
    be1 = 0.1 * jax.random.normal(ks[3], (cout,), jnp.float32)
    w2 = conv_w(ks[4], cout, cout)
    b2 = 0.1 * jax.random.normal(ks[5], (cout,), jnp.float32)
    g2 = 1.0 + 0.1 * jax.random.normal(ks[6], (cout,), jnp.float32)
    be2 = 0.1 * jax.random.normal(ks[7], (cout,), jnp.float32)
    w3 = conv_w(ks[8], cout, cout)
    b3 = 0.1 * jax.random.normal(ks[9], (cout,), jnp.float32)
    return (w1, b1, g1, be1, w2, b2, g2, be2, w3, b3)


if __name__ == "__main__":
    key = jax.random.PRNGKey(0)
    kx, kp = jax.random.split(key)

    # Upsampled output: 16x16; lane width W2*Cout = 128 -> fully lane-dense slabs.
    N, Cin, Cout, H, W = 2, 4, 8, 8, 8
    x = jax.random.normal(kx, (N, Cin, H, W), jnp.float32)
    params = _init_params(kp, Cin, Cout)

    out = jax.block_until_ready(upsample_block_apply(x, params, scale_factor=2))
    ref = jax.block_until_ready(_ref_forward(x, params, scale_factor=2))

    assert out.shape == (N, Cout, 2 * H, 2 * W), out.shape
    # Tolerance reflects bf16 MXU operands (f32 accumulation, exact f32 BN statistics) vs.
    # the pure-f32 reference; observed error is ~1e-3, tolerance kept conservative.
    max_err = float(jnp.max(jnp.abs(out - ref)))
    assert jnp.allclose(out, ref, atol=2e-2, rtol=2e-2), max_err
    print("KERNEL_OK")
</pallas_src>

<mosaic_0001>
module attributes {stable_mosaic.version = 11 : i64} {
  func.func @_upsample_block_kernel(%arg0: memref<36x32xbf16, #tpu.memory_space<vmem>>, %arg1: memref<864x128xbf16, #tpu.memory_space<vmem>>, %arg2: memref<8x128xf32, #tpu.memory_space<vmem>>, %arg3: memref<34x128xf32, #tpu.memory_space<vmem>>) attributes {dimension_semantics = [], scalar_prefetch = 0 : i64, scratch_operands = 0 : i64, tpu.core_type = #tpu.core_type<tc>} {
    %c0 = arith.constant 0 : index
    %c0_0 = arith.constant 0 : index
    %0 = vector.load %arg2[%c0, %c0_0] : memref<8x128xf32, #tpu.memory_space<vmem>>, vector<8x128xf32>
    %1 = vector.extract_strided_slice %0 {offsets = [0, 0], sizes = [1, 128], strides = [1, 1]} : vector<8x128xf32> to vector<1x128xf32>
    %2 = vector.extract_strided_slice %0 {offsets = [1, 0], sizes = [1, 128], strides = [1, 1]} : vector<8x128xf32> to vector<1x128xf32>
    %3 = vector.extract_strided_slice %0 {offsets = [2, 0], sizes = [1, 8], strides = [1, 1]} : vector<8x128xf32> to vector<1x8xf32>
    %4 = vector.extract_strided_slice %0 {offsets = [3, 0], sizes = [1, 8], strides = [1, 1]} : vector<8x128xf32> to vector<1x8xf32>
    %5 = vector.extract_strided_slice %0 {offsets = [4, 0], sizes = [1, 8], strides = [1, 1]} : vector<8x128xf32> to vector<1x8xf32>
    %6 = vector.extract_strided_slice %0 {offsets = [5, 0], sizes = [1, 8], strides = [1, 1]} : vector<8x128xf32> to vector<1x8xf32>
    %7 = tpu.iota {dimensions = array<i32: 0>} : vector<34x1xi32>
    %c18_i32 = arith.constant 18 : i32
    %c0_i32 = arith.constant 0 : i32
    %8 = arith.cmpi eq, %c18_i32, %c0_i32 : i32
    %c1_i32 = arith.constant 1 : i32
    %9 = arith.select %8, %c1_i32, %c18_i32 : i32
    %10 = vector.broadcast %9 : i32 to vector<34x1xi32>
    %11 = arith.remsi %7, %10 : vector<34x1xi32>
    %c0_i32_1 = arith.constant 0 : i32
    %12 = vector.broadcast %c0_i32_1 : i32 to vector<34x1xi32>
    %13 = arith.cmpi ne, %11, %12 : vector<34x1xi32>
    %c0_i32_2 = arith.constant 0 : i32
    %14 = vector.broadcast %c0_i32_2 : i32 to vector<34x1xi32>
    %15 = arith.cmpi slt, %11, %14 : vector<34x1xi32>
    %c0_i32_3 = arith.constant 0 : i32
    %16 = arith.cmpi slt, %9, %c0_i32_3 : i32
    %17 = vector.broadcast %16 : i1 to vector<34x1xi1>
    %18 = vector.broadcast %17 : vector<34x1xi1> to vector<34x1xi1>
    %19 = arith.xori %15, %18 : vector<34x1xi1>
    %20 = arith.andi %19, %13 : vector<34x1xi1>
    %21 = vector.broadcast %9 : i32 to vector<34x1xi32>
    %22 = arith.addi %11, %21 : vector<34x1xi32>
    %23 = arith.select %20, %22, %11 : vector<34x1xi1>, vector<34x1xi32>
    %c16_i32 = arith.constant 16 : i32
    %24 = vector.broadcast %c16_i32 : i32 to vector<34x1xi32>
    %25 = arith.cmpi slt, %23, %24 : vector<34x1xi32>
    %26 = arith.extui %25 : vector<34x1xi1> to vector<34x1xi32>
    %27 = arith.sitofp %26 : vector<34x1xi32> to vector<34x1xf32>
    %cst = arith.constant 0.000000e+00 : bf16
    %28 = vector.broadcast %cst : bf16 to vector<1x128xbf16>
    %c0_4 = arith.constant 0 : index
    %c0_5 = arith.constant 0 : index
    %29 = vector.load %arg0[%c0_4, %c0_5] : memref<36x32xbf16, #tpu.memory_space<vmem>>, vector<36x32xbf16>
    %c0_6 = arith.constant 0 : index
    %c0_7 = arith.constant 0 : index
    %30 = vector.load %arg1[%c0_6, %c0_7] : memref<864x128xbf16, #tpu.memory_space<vmem>>, vector<96x128xbf16>
    %31 = vector.extract_strided_slice %29 {offsets = [0, 0], sizes = [34, 32], strides = [1, 1]} : vector<36x32xbf16> to vector<34x32xbf16>
    %32 = vector.extract_strided_slice %29 {offsets = [1, 0], sizes = [34, 32], strides = [1, 1]} : vector<36x32xbf16> to vector<34x32xbf16>
    %33 = vector.extract_strided_slice %29 {offsets = [2, 0], sizes = [34, 32], strides = [1, 1]} : vector<36x32xbf16> to vector<34x32xbf16>
    %34 = tpu.concatenate %31, %32, %33 in 1 : vector<34x32xbf16>, vector<34x32xbf16>, vector<34x32xbf16> -> vector<34x96xbf16>
    %cst_8 = arith.constant dense<0.000000e+00> : vector<34x128xf32>
    %35 = tpu.matmul %34, %30, %cst_8 {dimension_numbers = #tpu.dot_dimension_numbers<[1], [0], [0], [1], [0, 0, 1, 1], [], []>} : vector<34x96xbf16>, vector<96x128xbf16>, vector<34x128xf32> -> vector<34x128xf32>
    %36 = vector.broadcast %1 : vector<1x128xf32> to vector<34x128xf32>
    %37 = arith.addf %35, %36 : vector<34x128xf32>
    %cst_9 = arith.constant 0.000000e+00 : f32
    %38 = vector.broadcast %cst_9 : f32 to vector<34x128xf32>
    %39 = arith.maximumf %37, %38 : vector<34x128xf32>
    %40 = vector.broadcast %27 : vector<34x1xf32> to vector<34x128xf32>
    %41 = arith.mulf %39, %40 : vector<34x128xf32>
    %cst_10 = arith.constant dense<0.000000e+00> : vector<128xf32>
    %42 = vector.multi_reduction <add>, %41, %cst_10 [0] : vector<34x128xf32> to vector<128xf32>
    %43 = vector.shape_cast %42 : vector<128xf32> to vector<1x128xf32>
    %44 = arith.mulf %41, %41 : vector<34x128xf32>
    %cst_11 = arith.constant dense<0.000000e+00> : vector<128xf32>
    %45 = vector.multi_reduction <add>, %44, %cst_11 [0] : vector<34x128xf32> to vector<128xf32>
    %46 = vector.shape_cast %45 : vector<128xf32> to vector<1x128xf32>
    %47 = tpu.concatenate %43, %46 in 0 : vector<1x128xf32>, vector<1x128xf32> -> vector<2x128xf32>
    %48 = vector.extract_strided_slice %47 {offsets = [0, 0], sizes = [2, 8], strides = [1, 1]} : vector<2x128xf32> to vector<2x8xf32>
    %49 = vector.extract_strided_slice %47 {offsets = [0, 8], sizes = [2, 8], strides = [1, 1]} : vector<2x128xf32> to vector<2x8xf32>
    %50 = arith.addf %48, %49 : vector<2x8xf32>
    %51 = vector.extract_strided_slice %47 {offsets = [0, 16], sizes = [2, 8], strides = [1, 1]} : vector<2x128xf32> to vector<2x8xf32>
    %52 = arith.addf %50, %51 : vector<2x8xf32>
    %53 = vector.extract_strided_slice %47 {offsets = [0, 24], sizes = [2, 8], strides = [1, 1]} : vector<2x128xf32> to vector<2x8xf32>
    %54 = arith.addf %52, %53 : vector<2x8xf32>
    %55 = vector.extract_strided_slice %47 {offsets = [0, 32], sizes = [2, 8], strides = [1, 1]} : vector<2x128xf32> to vector<2x8xf32>
    %56 = arith.addf %54, %55 : vector<2x8xf32>
    %57 = vector.extract_strided_slice %47 {offsets = [0, 40], sizes = [2, 8], strides = [1, 1]} : vector<2x128xf32> to vector<2x8xf32>
    %58 = arith.addf %56, %57 : vector<2x8xf32>
    %59 = vector.extract_strided_slice %47 {offsets = [0, 48], sizes = [2, 8], strides = [1, 1]} : vector<2x128xf32> to vector<2x8xf32>
    %60 = arith.addf %58, %59 : vector<2x8xf32>
    %61 = vector.extract_strided_slice %47 {offsets = [0, 56], sizes = [2, 8], strides = [1, 1]} : vector<2x128xf32> to vector<2x8xf32>
    %62 = arith.addf %60, %61 : vector<2x8xf32>
    %63 = vector.extract_strided_slice %47 {offsets = [0, 64], sizes = [2, 8], strides = [1, 1]} : vector<2x128xf32> to vector<2x8xf32>
    %64 = arith.addf %62, %63 : vector<2x8xf32>
    %65 = vector.extract_strided_slice %47 {offsets = [0, 72], sizes = [2, 8], strides = [1, 1]} : vector<2x128xf32> to vector<2x8xf32>
    %66 = arith.addf %64, %65 : vector<2x8xf32>
    %67 = vector.extract_strided_slice %47 {offsets = [0, 80], sizes = [2, 8], strides = [1, 1]} : vector<2x128xf32> to vector<2x8xf32>
    %68 = arith.addf %66, %67 : vector<2x8xf32>
    %69 = vector.extract_strided_slice %47 {offsets = [0, 88], sizes = [2, 8], strides = [1, 1]} : vector<2x128xf32> to vector<2x8xf32>
    %70 = arith.addf %68, %69 : vector<2x8xf32>
    %71 = vector.extract_strided_slice %47 {offsets = [0, 96], sizes = [2, 8], strides = [1, 1]} : vector<2x128xf32> to vector<2x8xf32>
    %72 = arith.addf %70, %71 : vector<2x8xf32>
    %73 = vector.extract_strided_slice %47 {offsets = [0, 104], sizes = [2, 8], strides = [1, 1]} : vector<2x128xf32> to vector<2x8xf32>
    %74 = arith.addf %72, %73 : vector<2x8xf32>
    %75 = vector.extract_strided_slice %47 {offsets = [0, 112], sizes = [2, 8], strides = [1, 1]} : vector<2x128xf32> to vector<2x8xf32>
    %76 = arith.addf %74, %75 : vector<2x8xf32>
    %77 = vector.extract_strided_slice %47 {offsets = [0, 120], sizes = [2, 8], strides = [1, 1]} : vector<2x128xf32> to vector<2x8xf32>
    %78 = arith.addf %76, %77 : vector<2x8xf32>
    %79 = vector.extract_strided_slice %78 {offsets = [0, 0], sizes = [1, 8], strides = [1, 1]} : vector<2x8xf32> to vector<1x8xf32>
    %cst_12 = arith.constant 0.001953125 : f32
    %80 = vector.broadcast %cst_12 : f32 to vector<1x8xf32>
    %81 = arith.mulf %79, %80 : vector<1x8xf32>
    %82 = vector.extract_strided_slice %78 {offsets = [1, 0], sizes = [1, 8], strides = [1, 1]} : vector<2x8xf32> to vector<1x8xf32>
    %cst_13 = arith.constant 0.001953125 : f32
    %83 = vector.broadcast %cst_13 : f32 to vector<1x8xf32>
    %84 = arith.mulf %82, %83 : vector<1x8xf32>
    %85 = arith.mulf %81, %81 : vector<1x8xf32>
    %86 = arith.subf %84, %85 : vector<1x8xf32>
    %cst_14 = arith.constant 9.99999974E-6 : f32
    %87 = vector.broadcast %cst_14 : f32 to vector<1x8xf32>
    %88 = arith.addf %86, %87 : vector<1x8xf32>
    %89 = math.rsqrt %88 : vector<1x8xf32>
    %90 = arith.mulf %3, %89 : vector<1x8xf32>
    %91 = arith.mulf %81, %90 : vector<1x8xf32>
    %92 = arith.subf %4, %91 : vector<1x8xf32>
    %93 = tpu.concatenate %90, %92 in 0 : vector<1x8xf32>, vector<1x8xf32> -> vector<2x8xf32>
    %94 = tpu.concatenate %93, %93 in 1 : vector<2x8xf32>, vector<2x8xf32> -> vector<2x16xf32>
    %95 = tpu.concatenate %94, %94 in 1 : vector<2x16xf32>, vector<2x16xf32> -> vector<2x32xf32>
    %96 = tpu.concatenate %95, %95 in 1 : vector<2x32xf32>, vector<2x32xf32> -> vector<2x64xf32>
    %97 = tpu.concatenate %96, %96 in 1 : vector<2x64xf32>, vector<2x64xf32> -> vector<2x128xf32>
    %98 = vector.extract_strided_slice %97 {offsets = [0, 0], sizes = [1, 128], strides = [1, 1]} : vector<2x128xf32> to vector<1x128xf32>
    %99 = vector.broadcast %98 : vector<1x128xf32> to vector<34x128xf32>
    %100 = arith.mulf %39, %99 : vector<34x128xf32>
    %101 = vector.extract_strided_slice %97 {offsets = [1, 0], sizes = [1, 128], strides = [1, 1]} : vector<2x128xf32> to vector<1x128xf32>
    %102 = vector.broadcast %101 : vector<1x128xf32> to vector<34x128xf32>
    %103 = arith.addf %100, %102 : vector<34x128xf32>
    %cst_15 = arith.constant 0.000000e+00 : f32
    %104 = vector.broadcast %cst_15 : f32 to vector<34x128xf32>
    %105 = arith.maximumf %103, %104 : vector<34x128xf32>
    %106 = vector.broadcast %27 : vector<34x1xf32> to vector<34x128xf32>
    %107 = arith.mulf %105, %106 : vector<34x128xf32>
    %108 = arith.truncf %107 : vector<34x128xf32> to vector<34x128xbf16>
    %109 = tpu.concatenate %28, %108, %28 in 0 : vector<1x128xbf16>, vector<34x128xbf16>, vector<1x128xbf16> -> vector<36x128xbf16>
    %c96 = arith.constant 96 : index
    %c0_16 = arith.constant 0 : index
    %110 = vector.load %arg1[%c96, %c0_16] : memref<864x128xbf16, #tpu.memory_space<vmem>>, vector<384x128xbf16>
    %111 = vector.extract_strided_slice %109 {offsets = [0, 0], sizes = [34, 128], strides = [1, 1]} : vector<36x128xbf16> to vector<34x128xbf16>
    %112 = vector.extract_strided_slice %109 {offsets = [1, 0], sizes = [34, 128], strides = [1, 1]} : vector<36x128xbf16> to vector<34x128xbf16>
    %113 = vector.extract_strided_slice %109 {offsets = [2, 0], sizes = [34, 128], strides = [1, 1]} : vector<36x128xbf16> to vector<34x128xbf16>
    %114 = tpu.concatenate %111, %112, %113 in 1 : vector<34x128xbf16>, vector<34x128xbf16>, vector<34x128xbf16> -> vector<34x384xbf16>
    %cst_17 = arith.constant dense<0.000000e+00> : vector<34x128xf32>
    %115 = tpu.matmul %114, %110, %cst_17 {dimension_numbers = #tpu.dot_dimension_numbers<[1], [0], [0], [1], [0, 0, 1, 1], [], []>} : vector<34x384xbf16>, vector<384x128xbf16>, vector<34x128xf32> -> vector<34x128xf32>
    %116 = vector.broadcast %27 : vector<34x1xf32> to vector<34x128xf32>
    %117 = arith.mulf %115, %116 : vector<34x128xf32>
    %cst_18 = arith.constant dense<0.000000e+00> : vector<128xf32>
    %118 = vector.multi_reduction <add>, %117, %cst_18 [0] : vector<34x128xf32> to vector<128xf32>
    %119 = vector.shape_cast %118 : vector<128xf32> to vector<1x128xf32>
    %120 = arith.mulf %117, %117 : vector<34x128xf32>
    %cst_19 = arith.constant dense<0.000000e+00> : vector<128xf32>
    %121 = vector.multi_reduction <add>, %120, %cst_19 [0] : vector<34x128xf32> to vector<128xf32>
    %122 = vector.shape_cast %121 : vector<128xf32> to vector<1x128xf32>
    %123 = tpu.concatenate %119, %122 in 0 : vector<1x128xf32>, vector<1x128xf32> -> vector<2x128xf32>
    %124 = vector.extract_strided_slice %123 {offsets = [0, 0], sizes = [2, 8], strides = [1, 1]} : vector<2x128xf32> to vector<2x8xf32>
    %125 = vector.extract_strided_slice %123 {offsets = [0, 8], sizes = [2, 8], strides = [1, 1]} : vector<2x128xf32> to vector<2x8xf32>
    %126 = arith.addf %124, %125 : vector<2x8xf32>
    %127 = vector.extract_strided_slice %123 {offsets = [0, 16], sizes = [2, 8], strides = [1, 1]} : vector<2x128xf32> to vector<2x8xf32>
    %128 = arith.addf %126, %127 : vector<2x8xf32>
    %129 = vector.extract_strided_slice %123 {offsets = [0, 24], sizes = [2, 8], strides = [1, 1]} : vector<2x128xf32> to vector<2x8xf32>
    %130 = arith.addf %128, %129 : vector<2x8xf32>
    %131 = vector.extract_strided_slice %123 {offsets = [0, 32], sizes = [2, 8], strides = [1, 1]} : vector<2x128xf32> to vector<2x8xf32>
    %132 = arith.addf %130, %131 : vector<2x8xf32>
    %133 = vector.extract_strided_slice %123 {offsets = [0, 40], sizes = [2, 8], strides = [1, 1]} : vector<2x128xf32> to vector<2x8xf32>
    %134 = arith.addf %132, %133 : vector<2x8xf32>
    %135 = vector.extract_strided_slice %123 {offsets = [0, 48], sizes = [2, 8], strides = [1, 1]} : vector<2x128xf32> to vector<2x8xf32>
    %136 = arith.addf %134, %135 : vector<2x8xf32>
    %137 = vector.extract_strided_slice %123 {offsets = [0, 56], sizes = [2, 8], strides = [1, 1]} : vector<2x128xf32> to vector<2x8xf32>
    %138 = arith.addf %136, %137 : vector<2x8xf32>
    %139 = vector.extract_strided_slice %123 {offsets = [0, 64], sizes = [2, 8], strides = [1, 1]} : vector<2x128xf32> to vector<2x8xf32>
    %140 = arith.addf %138, %139 : vector<2x8xf32>
    %141 = vector.extract_strided_slice %123 {offsets = [0, 72], sizes = [2, 8], strides = [1, 1]} : vector<2x128xf32> to vector<2x8xf32>
    %142 = arith.addf %140, %141 : vector<2x8xf32>
    %143 = vector.extract_strided_slice %123 {offsets = [0, 80], sizes = [2, 8], strides = [1, 1]} : vector<2x128xf32> to vector<2x8xf32>
    %144 = arith.addf %142, %143 : vector<2x8xf32>
    %145 = vector.extract_strided_slice %123 {offsets = [0, 88], sizes = [2, 8], strides = [1, 1]} : vector<2x128xf32> to vector<2x8xf32>
    %146 = arith.addf %144, %145 : vector<2x8xf32>
    %147 = vector.extract_strided_slice %123 {offsets = [0, 96], sizes = [2, 8], strides = [1, 1]} : vector<2x128xf32> to vector<2x8xf32>
    %148 = arith.addf %146, %147 : vector<2x8xf32>
    %149 = vector.extract_strided_slice %123 {offsets = [0, 104], sizes = [2, 8], strides = [1, 1]} : vector<2x128xf32> to vector<2x8xf32>
    %150 = arith.addf %148, %149 : vector<2x8xf32>
    %151 = vector.extract_strided_slice %123 {offsets = [0, 112], sizes = [2, 8], strides = [1, 1]} : vector<2x128xf32> to vector<2x8xf32>
    %152 = arith.addf %150, %151 : vector<2x8xf32>
    %153 = vector.extract_strided_slice %123 {offsets = [0, 120], sizes = [2, 8], strides = [1, 1]} : vector<2x128xf32> to vector<2x8xf32>
    %154 = arith.addf %152, %153 : vector<2x8xf32>
    %155 = vector.extract_strided_slice %154 {offsets = [0, 0], sizes = [1, 8], strides = [1, 1]} : vector<2x8xf32> to vector<1x8xf32>
    %cst_20 = arith.constant 0.001953125 : f32
    %156 = vector.broadcast %cst_20 : f32 to vector<1x8xf32>
    %157 = arith.mulf %155, %156 : vector<1x8xf32>
    %158 = vector.extract_strided_slice %154 {offsets = [1, 0], sizes = [1, 8], strides = [1, 1]} : vector<2x8xf32> to vector<1x8xf32>
    %cst_21 = arith.constant 0.001953125 : f32
    %159 = vector.broadcast %cst_21 : f32 to vector<1x8xf32>
    %160 = arith.mulf %158, %159 : vector<1x8xf32>
    %161 = arith.mulf %157, %157 : vector<1x8xf32>
    %162 = arith.subf %160, %161 : vector<1x8xf32>
    %cst_22 = arith.constant 9.99999974E-6 : f32
    %163 = vector.broadcast %cst_22 : f32 to vector<1x8xf32>
    %164 = arith.addf %162, %163 : vector<1x8xf32>
    %165 = math.rsqrt %164 : vector<1x8xf32>
    %166 = arith.mulf %5, %165 : vector<1x8xf32>
    %167 = arith.mulf %157, %166 : vector<1x8xf32>
    %168 = arith.subf %6, %167 : vector<1x8xf32>
    %169 = tpu.concatenate %166, %168 in 0 : vector<1x8xf32>, vector<1x8xf32> -> vector<2x8xf32>
    %170 = tpu.concatenate %169, %169 in 1 : vector<2x8xf32>, vector<2x8xf32> -> vector<2x16xf32>
    %171 = tpu.concatenate %170, %170 in 1 : vector<2x16xf32>, vector<2x16xf32> -> vector<2x32xf32>
    %172 = tpu.concatenate %171, %171 in 1 : vector<2x32xf32>, vector<2x32xf32> -> vector<2x64xf32>
    %173 = tpu.concatenate %172, %172 in 1 : vector<2x64xf32>, vector<2x64xf32> -> vector<2x128xf32>
    %174 = vector.extract_strided_slice %173 {offsets = [0, 0], sizes = [1, 128], strides = [1, 1]} : vector<2x128xf32> to vector<1x128xf32>
    %175 = vector.broadcast %174 : vector<1x128xf32> to vector<34x128xf32>
    %176 = arith.mulf %115, %175 : vector<34x128xf32>
    %177 = vector.extract_strided_slice %173 {offsets = [1, 0], sizes = [1, 128], strides = [1, 1]} : vector<2x128xf32> to vector<1x128xf32>
    %178 = vector.broadcast %177 : vector<1x128xf32> to vector<34x128xf32>
    %179 = arith.addf %176, %178 : vector<34x128xf32>
    %cst_23 = arith.constant 0.000000e+00 : f32
    %180 = vector.broadcast %cst_23 : f32 to vector<34x128xf32>
    %181 = arith.maximumf %179, %180 : vector<34x128xf32>
    %182 = vector.broadcast %27 : vector<34x1xf32> to vector<34x128xf32>
    %183 = arith.mulf %181, %182 : vector<34x128xf32>
    %184 = arith.truncf %183 : vector<34x128xf32> to vector<34x128xbf16>
    %185 = tpu.concatenate %28, %184, %28 in 0 : vector<1x128xbf16>, vector<34x128xbf16>, vector<1x128xbf16> -> vector<36x128xbf16>
    %c480 = arith.constant 480 : index
    %c0_24 = arith.constant 0 : index
    %186 = vector.load %arg1[%c480, %c0_24] : memref<864x128xbf16, #tpu.memory_space<vmem>>, vector<384x128xbf16>
    %187 = vector.extract_strided_slice %185 {offsets = [0, 0], sizes = [34, 128], strides = [1, 1]} : vector<36x128xbf16> to vector<34x128xbf16>
    %188 = vector.extract_strided_slice %185 {offsets = [1, 0], sizes = [34, 128], strides = [1, 1]} : vector<36x128xbf16> to vector<34x128xbf16>
    %189 = vector.extract_strided_slice %185 {offsets = [2, 0], sizes = [34, 128], strides = [1, 1]} : vector<36x128xbf16> to vector<34x128xbf16>
    %190 = tpu.concatenate %187, %188, %189 in 1 : vector<34x128xbf16>, vector<34x128xbf16>, vector<34x128xbf16> -> vector<34x384xbf16>
    %cst_25 = arith.constant dense<0.000000e+00> : vector<34x128xf32>
    %191 = tpu.matmul %190, %186, %cst_25 {dimension_numbers = #tpu.dot_dimension_numbers<[1], [0], [0], [1], [0, 0, 1, 1], [], []>} : vector<34x384xbf16>, vector<384x128xbf16>, vector<34x128xf32> -> vector<34x128xf32>
    %192 = vector.broadcast %2 : vector<1x128xf32> to vector<34x128xf32>
    %193 = arith.addf %191, %192 : vector<34x128xf32>
    %194 = arith.addf %39, %193 : vector<34x128xf32>
    %c0_26 = arith.constant 0 : index
    %c0_27 = arith.constant 0 : index
    %195 = vector.load %arg3[%c0_26, %c0_27] : memref<34x128xf32, #tpu.memory_space<vmem>>, vector<34x128xf32>
    tpu.vector_store %arg3[%c0_26, %c0_27], %194 {strides = array<i32>} : memref<34x128xf32, #tpu.memory_space<vmem>>, vector<34x128xf32>,
    return
  }
}

</mosaic_0001>

<bundles_post_ra>
// kernel: tpu_custom_call.1
= control target key start
LH: loop header
LB: loop body
LE: loop exit
PB: predicated region body
PF: predicated region fallthrough
CT: control target
= control target key end

     0   :  { %8 = vsyncpa [#allocation3], 0  ;;  %s2147_s0 = inlined_call_operand.vmem [shape: bf16[36,32], index: 0, kind: input, shape index: {}]   ;;  %s2148_s1 = inlined_call_operand.hbm [shape: bf16[864,128], index: 1, kind: input, shape index: {}]   ;;  %s2149_s2 = inlined_call_operand.vmem [shape: f32[8,128], index: 2, kind: input, shape index: {}]   ;;  %s2150_s3 = inlined_call_operand.hbm [shape: f32[34,128], index: 3, kind: output, shape index: {}]  }
   0x1   :  { %9 = vsyncpa [#allocation4], 0  ;;  %s16_s14 = sshll.u32 %s2148_s1, 4  ;;  %s1820_s15 = smov [#allocation2]   ;;  %s17_s14 = int_to_ptr.hbm [resolvable:$true] %s16_s14 }
   0x2   :  { %s18_s16 = sshll.u32 %s1820_s15, 4  ;;  %s1821_s17 = smov 64   ;;  %s19_s16 = int_to_ptr.vmem [resolvable:$true] %s18_s16 }
   0x3   :  { %s1822_s18 = smov 4  }
   0x4   :  { %24 = dma.hbm_to_vmem [thread:$0]  %s17_s14, 6912, %s19_s16, [#allocation3], %s1821_s17, %s1821_s17, %s1822_s18  }
   0x5   :  { %1816 = dma.done.wait [#allocation3], 6912  }
   0x6   :  { %1817 = vsyncadd [#allocation3], 4294960384  ;;  %v1678_v0 = vld [vmem:[%s2147_s0] sm:$0xff]  ;;  %v1679_v1 = vld [vmem:[%s2147_s0 + $0x8] sm:$0xff]  ;;  %vm254_vm0 = vsmask.f32 7424  ;;  %v33_v42 = vlaneseq }
   0x7   :  { %v228_v2 = vld [vmem:[%s2147_s0 + $0x10] sm:$0x3]  ;;  %v1685_v4 = vld [vmem:[#allocation2 + $0x28] sm:$0xff]  ;;  %v256_v5 = vshrl.u32 %v1678_v0, 16  ;;  %v258_v6 = vshll.u32 %v1678_v0, 16  ;;  %v263_v7 = vshll.u32 %v1679_v1, 16 }
   0x8   :  { %v250_v3 = vunpack.c.l.b16 %v228_v2  ;;  %v267_v9 = vshrl.u32 %v1679_v1, 16  ;;  %356 = vmatpush.bf16.msra.mxu0 %v1685_v4  ;;  %v1684_v10 = vld [vmem:[#allocation2 + $0x20] sm:$0xff]  ;;  %v1683_v18 = vld [vmem:[#allocation2 + $0x18] sm:$0xff]  ;;  %s1823_s0 = smov 32   ;;  %v285_v22 = vrot.slane %v1678_v0, 1  ;;  %v286_v23 = vrot.slane %v1679_v1, 1 }
   0x9   :  { %v260_v11 = vrot.slane %v258_v6, 1  ;;  %v265_v12 = vrot.slane %v263_v7, 1  ;;  %vm284_vm1 = vcmask 1046528   ;;  %v1682_v25 = vld [vmem:[#allocation2 + $0x10] sm:$0xff]  ;;  %v1681_v28 = vld [vmem:[#allocation2 + $0x8] sm:$0xff]  ;;  %v1680_v29 = vld [vmem:[#allocation2] sm:$0xff] }
   0xa   :  { %v253_v8 = vpack.c.b16 %v250_v3, %v250_v3  ;;  %v287_v26 = vsel %vm284_vm1, %v285_v22, %v286_v23  ;;  %vm296_vm2 = vcmask 261120   ;;  %vm303_vm3 = vcmask 523264   ;;  %s1826_s26 = smov 104   ;;  %s1827_s27 = smov 112  }
   0xb   :  { %v261_v15 = vor.u32 %v260_v11, %v256_v5  ;;  %v269_v16 = vor.u32 %v267_v9, %v265_v12  ;;  %vm347_vm4 = vcmask 785408   ;;  %v1891_v43 = vshrl.u32 %v33_v42, 7  ;;  %s1828_s28 = smov 120   ;;  %s1829_s29 = smov 80  }
   0xc   :  { %v271_v13 = vshll.u32 %v253_v8, 16  ;;  %v275_v14 = vshrl.u32 %v253_v8, 16  ;;  %357 = vmatpush.bf16.msra.mxu0 %v1684_v10  ;;  %v288_v24 = vrot.slane %v253_v8, 1  ;;  %v1824_v9 = vmov 0   ;;  %s1830_s30 = smov 88   ;;  %s1831_s4 = smov 96  }
   0xd   :  { %v266_v19 = vsel %vm254_vm0, %v261_v15, %v265_v12  ;;  %v1894_v44 = vadd.s32 8, %v1891_v43  ;;  %v42_v46 = vand.u32 65535, %v1891_v43  ;;  %v1899_v47 = vadd.s32 16, %v1891_v43  ;;  %s1832_s5 = smov 56   ;;  %s1833_s6 = smov 72  }
   0xe   :  { %v273_v17 = vrot.slane %v271_v13, 1  ;;  %278 = vrot.lane.b32.xlu0 %v266_v19, %s1823_s0  ;;  %v289_v27 = vsel %vm284_vm1, %v286_v23, %v288_v24  ;;  %v43_v50 = vshrl.u32 %v1891_v43, 16  ;;  %v1906_v51 = vadd.s32 24, %v1891_v43  ;;  %s1834_s7 = smov 40   ;;  %s1835_s8 = smov 48  }
   0xf   :  { %v71_v45 = vand.u32 65535, %v1894_v44  ;;  %v72_v48 = vshrl.u32 %v1894_v44, 16  ;;  %v1908_v52 = vmul.u32 58254, %v42_v46  ;;  %v100_v53 = vand.u32 65535, %v1899_v47  ;;  %s1836_s9 = smov 8   ;;  %s1837_s10 = smov 16  }
  0x10   :  { %v274_v20 = vsel %vm254_vm0, %v269_v16, %v273_v17  ;;  %v277_v21 = vor.u32 %v275_v14, %v273_v17  ;;  %358 = vmatpush.bf16.msra.mxu0 %v1683_v18  ;;  %v129_v57 = vand.u32 65535, %v1906_v51  ;;  %v1915_v58 = vmul.u32 14564, %v43_v50  ;;  %s1838_s11 = smov 24   ;;  %s1840_s18 = smov 128  }
  0x11   :  { %280 = vrot.lane.b32.xlu1 %v274_v20, %s1823_s0  ;;  %v1902_v49 = vmul.u32 58254, %v71_v45  ;;  %v1911_v54 = vmul.u32 14564, %v72_v48  ;;  %v74_v55 = vmul.u32 14564, %v71_v45  ;;  %v45_v59 = vmul.u32 14564, %v42_v46 }
  0x12   :  { %282 = vrot.lane.b32.xlu2 %v277_v21, %s1823_s0  ;;  %v49_v60 = vshll.u32 %v1908_v52, 16  ;;  %v101_v61 = vshrl.u32 %v1899_v47, 16  ;;  %v1919_v62 = vmul.u32 58254, %v100_v53  ;;  %v1923_v2 = vmul.u32 58254, %v129_v57 }
  0x13   :  { %v78_v56 = vshll.u32 %v1902_v49, 16  ;;  %v80_v63 = vshll.u32 %v1911_v54, 16  ;;  %v51_v3 = vshll.u32 %v1915_v58, 16  ;;  %v103_v4 = vmul.u32 14564, %v100_v53 }
  0x14   :  { %359 = vmatpush.bf16.msra.mxu0 %v1682_v25  ;;  %vm53_vm6 = vc.u32 %v45_v59, %v49_v60  ;;  %v1926_v5 = vmul.u32 14564, %v101_v61  ;;  %v107_v6 = vshll.u32 %v1919_v62, 16  ;;  %v55_v7 = vadd.s32 %v49_v60, %v45_v59 }
  0x15   :  { %vm82_vm5 = vc.u32 %v74_v55, %v78_v56  ;;  %v1930_v11 = vadd.s32 32, %v1891_v43  ;;  %v132_v12 = vmul.u32 14564, %v129_v57  ;;  %v136_v14 = vshll.u32 %v1923_v2, 16 }
  0x16   :  { %290 = vrot.lane.b32.xlu0 %v287_v26, %s1821_s17  ;;  %v83_v10 = vsel %vm82_vm5, 1, %v1824_v9  ;;  %v48_v15 = vmul.u32 58254, %v43_v50  ;;  %v54_v16 = vsel %vm53_vm6, 1, %v1824_v9  ;;  %v109_v18 = vshll.u32 %v1926_v5, 16 }
  0x17   :  { %v158_v17 = vand.u32 65535, %v1930_v11  ;;  %vm111_vm8 = vc.u32 %v103_v4, %v107_v6  ;;  %v113_v19 = vadd.s32 %v107_v6, %v103_v4  ;;  %v159_v20 = vshrl.u32 %v1930_v11, 16 }
  0x18   :  { %360 = vmatpush.bf16.msra.mxu0 %v1681_v28  ;;  %vm57_vm9 = vc.u32 %v55_v7, %v51_v3  ;;  %vm140_vm10 = vc.u32 %v132_v12, %v136_v14  ;;  %v142_v26 = vadd.s32 %v136_v14, %v132_v12  ;;  %v50_v42 = vshrl.u32 %v1908_v52, 16 }
  0x19   :  { %292 = vrot.lane.b32.xlu1 %v289_v27, %s1821_s17  ;;  %v162_v23 = vmul.u32 58254, %v158_v17  ;;  %v112_v27 = vsel %vm111_vm8, 1, %v1824_v9  ;;  %v161_v28 = vmul.u32 14564, %v158_v17  ;;  %vm115_vm11 = vc.u32 %v113_v19, %v109_v18 }
  0x1a   :  { %294 = vrot.lane.b32.xlu2 %v288_v24, %s1821_s17  ;;  %v106_v24 = vmul.u32 58254, %v101_v61  ;;  %v108_v50 = vshrl.u32 %v1919_v62, 16  ;;  %v137_v57 = vshrl.u32 %v1923_v2, 16  ;;  %v52_v60 = vshrl.u32 %v1915_v58, 16 }
  0x1b   :  { %v110_v52 = vshrl.u32 %v1926_v5, 16  ;;  %v166_v7 = vshrl.u32 %v162_v23, 16 }
  0x1c   :  { %361 = vmatpush.bf16.msra.mxu0 %v1680_v29  ;;  %v163_v29 = vmul.u32 14564, %v159_v20 }
  0x6c   :  { %v283_v38 = vpop.permute.xlu2 %282 }
  0x6d   :  { %v302_v39 = vsel %vm296_vm2, %v253_v8, %v283_v38  ;;  %v77_v8 = vmul.u32 58254, %v72_v48  ;;  %v116_v38 = vsel %vm115_vm11, 1, %v1824_v9  ;;  %v164_v48 = vmul.u32 58254, %v159_v20 }
  0x6f   :  { %v85_v21 = vadd.s32 %v83_v10, %v77_v8 }
  0x74   :  { %v295_v40 = vpop.permute.xlu2 %294 }
  0x75   :  { %v309_v41 = vsel %vm303_vm3, %v302_v39, %v295_v40  ;;  %v167_v39 = vshll.u32 %v163_v29, 16 }
  0x80   :  { %v279_v30 = vpop.permute.xlu0 %278 }
  0x81   :  { %v298_v31 = vsel %vm296_vm2, %v1678_v0, %v279_v30  ;;  %v84_v0 = vadd.s32 %v78_v56, %v74_v55  ;;  %v165_v30 = vshll.u32 %v162_v23, 16  ;;  %v81_v56 = vshrl.u32 %v1911_v54, 16 }
  0x83   :  { %v281_v34 = vpop.permute.xlu1 %280  ;;  %vm86_vm7 = vc.u32 %v84_v0, %v80_v63  ;;  %vm169_vm13 = vc.u32 %v161_v28, %v165_v30  ;;  %v171_v40 = vadd.s32 %v165_v30, %v161_v28  ;;  %v1954_v28 = vld [vmem:[%s2149_s2] sm:$0xff] }
  0x84   :  { %v300_v35 = vsel %vm296_vm2, %v1679_v1, %v281_v34  ;;  %v130_v1 = vshrl.u32 %v1906_v51, 16  ;;  %v87_v22 = vsel %vm86_vm7, 1, %v1824_v9  ;;  %v141_v34 = vsel %vm140_vm10, 1, %v1824_v9 }
  0x85   :  { %v170_v55 = vsel %vm169_vm13, 1, %v1824_v9  ;;  %vm173_vm14 = vc.u32 %v171_v40, %v167_v39  ;;  %v310_v30 = vperm.slane %v1954_v28, 0 }
  0x86   :  { %v1932_v13 = vmul.u32 14564, %v130_v1  ;;  %v172_v63 = vadd.s32 %v170_v55, %v164_v48 }
  0x88   :  { %v291_v32 = vpop.permute.xlu0 %290  ;;  %v138_v25 = vshll.u32 %v1932_v13, 16  ;;  %v139_v62 = vshrl.u32 %v1932_v13, 16 }
  0x89   :  { %v305_v33 = vsel %vm303_vm3, %v298_v31, %v291_v32  ;;  %v135_v31 = vmul.u32 58254, %v130_v1  ;;  %v56_v32 = vadd.s32 %v54_v16, %v48_v15  ;;  %v174_v1 = vsel %vm173_vm14, 1, %v1824_v9 }
  0x8a   :  { %1483 = vmatmul.msk.bf16.vlgmr.msra.gmra.mxu0 %vm347_vm4, %v305_v33  ;;  %v58_v33 = vsel %vm57_vm9, 1, %v1824_v9  ;;  %vm144_vm12 = vc.u32 %v142_v26, %v138_v25  ;;  %v176_v54 = vadd.s32 %v174_v1, %v172_v63  ;;  %v168_v15 = vshrl.u32 %v163_v29, 16 }
  0x8b   :  { %v293_v36 = vpop.permute.xlu1 %292  ;;  %v60_v45 = vadd.s32 %v58_v33, %v56_v32  ;;  %v145_v46 = vsel %vm144_vm12, 1, %v1824_v9 }
  0x8c   :  { %v307_v37 = vsel %vm303_vm3, %v300_v35, %v293_v36  ;;  %v79_v35 = vshrl.u32 %v1902_v49, 16  ;;  %v89_v36 = vadd.s32 %v87_v22, %v85_v21  ;;  %v177_v58 = vadd.s32 %v176_v54, %v166_v7 }
  0x8d   :  { %v61_v61 = vadd.s32 %v60_v45, %v50_v42  ;;  %v1825_v45 = vmov 0.0  }
  0x8e   :  { %v90_v49 = vadd.s32 %v89_v36, %v79_v35  ;;  %v178_v19 = vadd.s32 %v177_v58, %v168_v15 }
  0x8f   :  { %v62_v6 = vadd.s32 %v61_v61, %v52_v60 }
  0x90   :  { %v91_v3 = vadd.s32 %v90_v49, %v81_v56  ;;  %v179_v23 = vshrl.u32 %v178_v19, 4 }
  0x91   :  { %v63_v14 = vshrl.u32 %v62_v6, 4 }
  0x92   :  { %v92_v12 = vshrl.u32 %v91_v3, 4 }
  0x93   :  { %v64_v5 = vmul.u32 18, %v63_v14 }
  0x94   :  { %v93_v17 = vmul.u32 18, %v92_v12 }
  0x95   :  { %v65_v22 = vsub.s32 %v1891_v43, %v64_v5 }
  0x96   :  { %v94_v20 = vsub.s32 %v1894_v44, %v93_v17 }
  0x97   :  { %vm184_vm5 = vcmp.ne.s32.totalorder %v65_v22, 0  ;;  %vm189_vm6 = vcmp.lt.s32.totalorder %v65_v22, 0 }
  0x98   :  { %vm185_vm15 = vcmp.ne.s32.totalorder %v94_v20, 0  ;;  %v200_v26 = vadd.s32 18, %v94_v20  ;;  %vm1960_vm10 = vmand %vm189_vm6, %vm184_vm5 }
  0x9a   :  { %1484 = vmatmul.msk.bf16.gmra.mxu0 %vm347_vm4, %v307_v37  ;;  %v114_v37 = vadd.s32 %v112_v27, %v106_v24  ;;  %v180_v27 = vmul.u32 18, %v179_v23 }
  0x9c   :  { %v118_v53 = vadd.s32 %v116_v38, %v114_v37  ;;  %v181_v32 = vsub.s32 %v1930_v11, %v180_v27 }
  0x9e   :  { %v119_v0 = vadd.s32 %v118_v53, %v108_v50  ;;  %vm193_vm5 = vcmp.lt.s32.totalorder %v181_v32, 0  ;;  %v203_v42 = vadd.s32 18, %v181_v32 }
  0xa0   :  { %v120_v8 = vadd.s32 %v119_v0, %v110_v52 }
  0xa2   :  { %v121_v16 = vshrl.u32 %v120_v8, 4 }
  0xa4   :  { %v122_v9 = vmul.u32 18, %v121_v16 }
  0xa6   :  { %v123_v24 = vsub.s32 %v1899_v47, %v122_v9 }
  0xa8   :  { %vm186_vm8 = vcmp.ne.s32.totalorder %v123_v24, 0  ;;  %vm191_vm9 = vcmp.lt.s32.totalorder %v123_v24, 0  ;;  %v201_v29 = vadd.s32 18, %v123_v24 }
  0xa9   :  { %vm196_vm13 = vmand %vm191_vm9, %vm186_vm8 }
  0xaa   :  { %1485 = vmatmul.msk.bf16.gmra.mxu0 %vm347_vm4, %v309_v41  ;;  %v143_v41 = vadd.s32 %v141_v34, %v135_v31  ;;  %vm190_vm4 = vcmp.lt.s32.totalorder %v94_v20, 0  ;;  %v206_v37 = vsel %vm196_vm13, %v201_v29, %v123_v24 }
  0xab   :  { %vm1956_vm7 = vmand %vm190_vm4, %vm185_vm15  ;;  %vm188_vm4 = vcmp.ne.s32.totalorder %v181_v32, 0 }
  0xac   :  { %v147_v59 = vadd.s32 %v145_v46, %v143_v41  ;;  %v205_v31 = vsel %vm1956_vm7, %v200_v26, %v94_v20  ;;  %vm211_vm7 = vcmp.lt.s32.totalorder %v206_v37, 16  ;;  %vm198_vm8 = vmand %vm193_vm5, %vm188_vm4  ;;  %vm515_vm4 = vcmask 64512  }
  0xad   :  { %vm210_vm15 = vcmp.lt.s32.totalorder %v205_v31, 16  ;;  %v1986_v56 = vsel %vm211_vm7, 1.0, %v1825_v45  ;;  %vm521_vm5 = vcmask 130048   ;;  %vm604_vm7 = vsmask.f32 1280 }
  0xae   :  { %v148_v4 = vadd.s32 %v147_v59, %v137_v57  ;;  %v1978_v46 = vsel %vm210_vm15, 1.0, %v1825_v45  ;;  %v208_v59 = vsel %vm198_vm8, %v203_v42, %v181_v32 }
  0xb0   :  { %v149_v2 = vadd.s32 %v148_v4, %v139_v62 }
  0xb2   :  { %v150_v18 = vshrl.u32 %v149_v2, 4 }
  0xb4   :  { %v151_v21 = vmul.u32 18, %v150_v18 }
  0xb6   :  { %v152_v25 = vsub.s32 %v1906_v51, %v151_v21  ;;  %v199_v51 = vadd.s32 18, %v65_v22 }
  0xb8   :  { %vm187_vm11 = vcmp.ne.s32.totalorder %v152_v25, 0  ;;  %vm192_vm12 = vcmp.lt.s32.totalorder %v152_v25, 0  ;;  %v202_v33 = vadd.s32 18, %v152_v25  ;;  %v204_v36 = vsel %vm1960_vm10, %v199_v51, %v65_v22 }
  0xb9   :  { %vm1968_vm14 = vmand %vm192_vm12, %vm187_vm11  ;;  %vm209_vm6 = vcmp.lt.s32.totalorder %v204_v36, 16  ;;  %vm213_vm10 = vcmp.lt.s32.totalorder %v208_v59, 16  ;;  %vm390_vm11 = vcmask 1041408   ;;  %vm415_vm12 = vcmask 1040384  }
  0xba   :  { %v207_v40 = vsel %vm1968_vm14, %v202_v33, %v152_v25  ;;  %v1984_v55 = vsel %vm209_vm6, 1.0, %v1825_v45  ;;  %v2000_v7 = vsel %vm213_vm10, 1.0, %v1825_v45  ;;  %vm573_vm6 = vsmask.f32 256 }
  0xbb   :  { %vm212_vm9 = vcmp.lt.s32.totalorder %v207_v40, 16  ;;  %vm2047_vm8 = vmand %vm415_vm12, %vm573_vm6 }
  0xbc   :  { %v1992_v60 = vsel %vm212_vm9, 1.0, %v1825_v45  ;;  %vm2052_vm9 = vmand %vm390_vm11, %vm604_vm7 }
 0x107   :  { %v363_v10 = vpop.f32.mrf.mxu0 }
 0x108   :  { %v364_v38 = vadd.f32 %v363_v10, %v310_v30 }
 0x10a   :  { %v1980_v50 = vmax.f32 %v364_v38, 0.0 }
 0x10c   :  { %v382_v61 = vmul.f32 %v1984_v55, %v1980_v50 }
 0x10e   :  { %v399_v62 = vmul.f32 %v382_v61, %v382_v61 }
 0x10f   :  { %v365_v13 = vpop.f32.mrf.mxu0 }
 0x110   :  { %v366_v34 = vadd.f32 %v365_v13, %v310_v30 }
 0x112   :  { %v1976_v11 = vmax.f32 %v366_v34, 0.0 }
 0x114   :  { %v383_v49 = vmul.f32 %v1978_v46, %v1976_v11 }
 0x116   :  { %v400_v52 = vmul.f32 %v383_v49, %v383_v49  ;;  %v387_v4 = vadd.f32 %v383_v49, %v382_v61 }
 0x117   :  { %v368_v43 = vpop.f32.mrf.mxu0 }
 0x118   :  { %v369_v39 = vadd.f32 %v368_v43, %v310_v30  ;;  %v404_v8 = vadd.f32 %v400_v52, %v399_v62 }
 0x11a   :  { %v1982_v53 = vmax.f32 %v369_v39, 0.0 }
 0x11c   :  { %v384_v63 = vmul.f32 %v1986_v56, %v1982_v53 }
 0x11e   :  { %v401_v6 = vmul.f32 %v384_v63, %v384_v63  ;;  %v388_v10 = vadd.f32 %v387_v4, %v384_v63 }
 0x11f   :  { %v370_v41 = vpop.f32.mrf.mxu0 }
 0x120   :  { %v371_v48 = vadd.f32 %v370_v41, %v310_v30  ;;  %v405_v14 = vadd.f32 %v404_v8, %v401_v6 }
 0x122   :  { %v1990_v57 = vmax.f32 %v371_v48, 0.0 }
 0x124   :  { %v385_v0 = vmul.f32 %v1992_v60, %v1990_v57 }
 0x126   :  { %v402_v12 = vmul.f32 %v385_v0, %v385_v0  ;;  %v389_v15 = vadd.f32 %v388_v10, %v385_v0 }
 0x127   :  { %v373_v1 = vpop.f32.mrf.mxu0 }
 0x128   :  { %v374_v3 = vadd.f32 %v373_v1, %v310_v30  ;;  %v406_v17 = vadd.f32 %v405_v14, %v402_v12 }
 0x12a   :  { %v2002_v54 = vmax.f32 %v374_v3, 0.0 }
 0x12c   :  { %v386_v2 = vmul.f32 %v2000_v7, %v2002_v54 }
 0x12e   :  { %v391_v58 = vsel %vm390_vm11, %v386_v2, 0.0  ;;  %v403_v16 = vmul.f32 %v386_v2, %v386_v2 }
 0x12f   :  { %v392_v18 = vadd.f32 %v391_v58, %v389_v15  ;;  %v375_v5 = vpop.f32.mrf.mxu0 }
 0x130   :  { %v407_v19 = vsel %vm390_vm11, %v403_v16, 0.0 }
 0x131   :  { %v393_v9 = vrot.slane %v392_v18, 4  ;;  %v408_v20 = vadd.f32 %v407_v19, %v406_v17 }
 0x133   :  { %v394_v13 = vadd.f32 %v393_v9, %v392_v18  ;;  %v409_v21 = vrot.slane %v408_v20, 4 }
 0x135   :  { %v395_v22 = vrot.slane %v394_v13, 2  ;;  %v410_v23 = vadd.f32 %v409_v21, %v408_v20 }
 0x137   :  { %v396_v24 = vadd.f32 %v395_v22, %v394_v13  ;;  %v411_v25 = vrot.slane %v410_v23, 2 }
 0x139   :  { %v397_v26 = vrot.slane %v396_v24, 1  ;;  %v412_v27 = vadd.f32 %v411_v25, %v410_v23 }
 0x13b   :  { %v413_v44 = vrot.slane %v412_v27, 1  ;;  %v398_v43 = vadd.f32 %v397_v26, %v396_v24 }
 0x13d   :  { %v414_v47 = vadd.f32 %v413_v44, %v412_v27 }
 0x13f   :  { %v416_v51 = vsel %vm415_vm12, %v398_v43, %v414_v47 }
 0x140   :  { %426 = vrot.lane.b32.xlu2 %v416_v51, %s1826_s26  ;;  %422 = vrot.lane.b32.xlu1 %v416_v51, %s1827_s27 }
 0x141   :  { %418 = vrot.lane.b32.xlu0 %v416_v51, %s1828_s28 }
 0x148   :  { %438 = vrot.lane.b32.xlu2 %v416_v51, %s1829_s29  ;;  %434 = vrot.lane.b32.xlu1 %v416_v51, %s1830_s30 }
 0x149   :  { %430 = vrot.lane.b32.xlu0 %v416_v51, %s1831_s4 }
 0x150   :  { %450 = vrot.lane.b32.xlu2 %v416_v51, %s1832_s5  ;;  %446 = vrot.lane.b32.xlu1 %v416_v51, %s1821_s17 }
 0x151   :  { %442 = vrot.lane.b32.xlu0 %v416_v51, %s1833_s6 }
 0x158   :  { %462 = vrot.lane.b32.xlu2 %v416_v51, %s1823_s0  ;;  %458 = vrot.lane.b32.xlu1 %v416_v51, %s1834_s7 }
 0x159   :  { %454 = vrot.lane.b32.xlu0 %v416_v51, %s1835_s8 }
 0x160   :  { %474 = vrot.lane.b32.xlu2 %v416_v51, %s1836_s9  ;;  %470 = vrot.lane.b32.xlu1 %v416_v51, %s1837_s10 }
 0x161   :  { %466 = vrot.lane.b32.xlu0 %v416_v51, %s1838_s11 }
 0x19a   :  { %v427_v29 = vpop.permute.xlu2 %426 }
 0x1a2   :  { %v439_v34 = vpop.permute.xlu2 %438 }
 0x1aa   :  { %v451_v42 = vpop.permute.xlu2 %450 }
 0x1b2   :  { %v423_v30 = vpop.permute.xlu1 %422  ;;  %v463_v0 = vpop.permute.xlu2 %462 }
 0x1b3   :  { %v419_v31 = vpop.permute.xlu0 %418 }
 0x1b4   :  { %v421_v32 = vadd.f32 %v419_v31, %v416_v51  ;;  %v1692_v31 = vld [vmem:[#allocation2 + $0x60] sm:$0xff] }
 0x1b6   :  { %v425_v33 = vadd.f32 %v423_v30, %v421_v32  ;;  %v1693_v30 = vld [vmem:[#allocation2 + $0x68] sm:$0xff]  ;;  %v1691_v32 = vld [vmem:[#allocation2 + $0x58] sm:$0xff] }
 0x1b7   :  { %1734 = vmatpush.bf16.msra.mxu3 %v1693_v30  ;;  %835 = vmatpush.bf16.msra.mxu1 %v1693_v30 }
 0x1b8   :  { %v429_v36 = vadd.f32 %v427_v29, %v425_v33  ;;  %v1690_v33 = vld [vmem:[#allocation2 + $0x50] sm:$0xff] }
 0x1ba   :  { %v435_v35 = vpop.permute.xlu1 %434  ;;  %v475_v10 = vpop.permute.xlu2 %474 }
 0x1bb   :  { %v431_v37 = vpop.permute.xlu0 %430  ;;  %1735 = vmatpush.bf16.msra.mxu3 %v1692_v31  ;;  %836 = vmatpush.bf16.msra.mxu1 %v1692_v31 }
 0x1bc   :  { %v433_v38 = vadd.f32 %v431_v37, %v429_v36  ;;  %v1701_v37 = vld [vmem:[#allocation2 + $0xa8] sm:$0xff] }
 0x1bd   :  { %858 = vmatpush.bf16.msra.mxu2 %v1701_v37 }
 0x1be   :  { %v437_v39 = vadd.f32 %v435_v35, %v433_v38  ;;  %v1688_v38 = vld [vmem:[#allocation2 + $0x40] sm:$0xff] }
 0x1bf   :  { %1736 = vmatpush.bf16.msra.mxu3 %v1691_v32  ;;  %837 = vmatpush.bf16.msra.mxu1 %v1691_v32 }
 0x1c0   :  { %v441_v41 = vadd.f32 %v439_v34, %v437_v39  ;;  %v1689_v34 = vld [vmem:[#allocation2 + $0x48] sm:$0xff]  ;;  %v1700_v39 = vld [vmem:[#allocation2 + $0xa0] sm:$0xff] }
 0x1c1   :  { %859 = vmatpush.bf16.msra.mxu2 %v1700_v39 }
 0x1c2   :  { %v447_v40 = vpop.permute.xlu1 %446 }
 0x1c3   :  { %v443_v45 = vpop.permute.xlu0 %442  ;;  %1737 = vmatpush.bf16.msra.mxu3 %v1690_v33  ;;  %838 = vmatpush.bf16.msra.mxu1 %v1690_v33 }
 0x1c4   :  { %v445_v48 = vadd.f32 %v443_v45, %v441_v41  ;;  %v1699_v41 = vld [vmem:[#allocation2 + $0x98] sm:$0xff]  ;;  %v1709_v45 = vld [vmem:[#allocation2 + $0xe8] sm:$0xff] }
 0x1c5   :  { %860 = vmatpush.bf16.msra.mxu2 %v1699_v41 }
 0x1c6   :  { %v449_v49 = vadd.f32 %v447_v40, %v445_v48  ;;  %v1687_v40 = vld [vmem:[#allocation2 + $0x38] sm:$0xff]  ;;  %v1698_v48 = vld [vmem:[#allocation2 + $0x90] sm:$0xff] }
 0x1c7   :  { %1738 = vmatpush.bf16.msra.mxu3 %v1689_v34  ;;  %839 = vmatpush.bf16.msra.mxu1 %v1689_v34 }
 0x1c8   :  { %v453_v59 = vadd.f32 %v451_v42, %v449_v49  ;;  %v1686_v42 = vld [vmem:[#allocation2 + $0x30] sm:$0xff]  ;;  %v1708_v49 = vld [vmem:[#allocation2 + $0xe0] sm:$0xff] }
 0x1c9   :  { %861 = vmatpush.bf16.msra.mxu2 %v1698_v48 }
 0x1ca   :  { %v459_v61 = vpop.permute.xlu1 %458 }
 0x1cb   :  { %v455_v63 = vpop.permute.xlu0 %454  ;;  %1739 = vmatpush.bf16.msra.mxu3 %v1688_v38  ;;  %840 = vmatpush.bf16.msra.mxu1 %v1688_v38 }
 0x1cc   :  { %v457_v52 = vadd.f32 %v455_v63, %v453_v59  ;;  %v1697_v59 = vld [vmem:[#allocation2 + $0x88] sm:$0xff]  ;;  %v1696_v63 = vld [vmem:[#allocation2 + $0x80] sm:$0xff] }
 0x1cd   :  { %862 = vmatpush.bf16.msra.mxu2 %v1697_v59 }
 0x1ce   :  { %v461_v1 = vadd.f32 %v459_v61, %v457_v52  ;;  %v1707_v61 = vld [vmem:[#allocation2 + $0xd8] sm:$0xff]  ;;  %v1706_v52 = vld [vmem:[#allocation2 + $0xd0] sm:$0xff] }
 0x1cf   :  { %1740 = vmatpush.bf16.msra.mxu3 %v1687_v40  ;;  %841 = vmatpush.bf16.msra.mxu1 %v1687_v40 }
 0x1d0   :  { %v465_v3 = vadd.f32 %v463_v0, %v461_v1  ;;  %v1695_v0 = vld [vmem:[#allocation2 + $0x78] sm:$0xff]  ;;  %v1705_v1 = vld [vmem:[#allocation2 + $0xc8] sm:$0xff] }
 0x1d1   :  { %863 = vmatpush.bf16.msra.mxu2 %v1696_v63 }
 0x1d2   :  { %v471_v6 = vpop.permute.xlu1 %470 }
 0x1d3   :  { %v467_v62 = vpop.permute.xlu0 %466  ;;  %1741 = vmatpush.bf16.msra.mxu3 %v1686_v42  ;;  %842 = vmatpush.bf16.msra.mxu1 %v1686_v42 }
 0x1d4   :  { %v469_v4 = vadd.f32 %v467_v62, %v465_v3  ;;  %v1694_v3 = vld [vmem:[#allocation2 + $0x70] sm:$0xff]  ;;  %v1704_v62 = vld [vmem:[#allocation2 + $0xc0] sm:$0xff] }
 0x1d5   :  { %864 = vmatpush.bf16.msra.mxu2 %v1695_v0 }
 0x1d6   :  { %v473_v8 = vadd.f32 %v471_v6, %v469_v4  ;;  %v1703_v6 = vld [vmem:[#allocation2 + $0xb8] sm:$0xff] }
 0x1d7   :  { %881 = vmatpush.bf16.msrb.mxu3 %v1709_v45 }
 0x1d8   :  { %v477_v12 = vadd.f32 %v475_v10, %v473_v8 }
 0x1d9   :  { %865 = vmatpush.bf16.msra.mxu2 %v1694_v3 }
 0x1da   :  { %v478_v2 = vmul.f32 0.001953125, %v477_v12 }
 0x1db   :  { %882 = vmatpush.bf16.msrb.mxu3 %v1708_v49 }
 0x1dc   :  { %v479_v14 = vmul.f32 %v478_v2, %v478_v2 }
 0x1de   :  { %v481_v15 = vrot.slane %v479_v14, 7 }
 0x1df   :  { %883 = vmatpush.bf16.msrb.mxu3 %v1707_v61 }
 0x1e0   :  { %v483_v58 = vsub.f32 %v478_v2, %v481_v15 }
 0x1e2   :  { %v484_v16 = vadd.f32 1e-05, %v483_v58 }
 0x1e3   :  { %884 = vmatpush.bf16.msrb.mxu3 %v1706_v52 }
 0x1e4   :  { %1763 = vrsqrt.f32 %v484_v16  ;;  %vm491_vm14 = vweird.f32 %v484_v16 }
 0x1e7   :  { %885 = vmatpush.bf16.msrb.mxu3 %v1705_v1 }
 0x1ea   :  { %v1764_v17 = vpop.eup %1763 }
 0x1eb   :  { %v486_v18 = vmul.f32 %v1764_v17, %v484_v16  ;;  %vm492_vm13 = vweird.f32 %v1764_v17  ;;  %886 = vmatpush.bf16.msrb.mxu3 %v1704_v62  ;;  %v1702_v16 = vld [vmem:[#allocation2 + $0xb0] sm:$0xff]  ;;  %v1767_v62 = vld [vmem:[%s2149_s2] sm:$0xff]  ;;  %s1839_s2 = smov [#allocation5]  }
 0x1ec   :  { %vm493_vm15 = vmor %vm491_vm14, %vm492_vm13  ;;  %s1431_s14 = sshll.u32 %s1839_s2, 4  ;;  %s1432_s14 = int_to_ptr.vmem [resolvable:$true] %s1431_s14 }
 0x1ed   :  { %v487_v5 = vmul.f32 %v1764_v17, %v486_v18 }
 0x1ef   :  { %v488_v19 = vmul.f32 0.5, %v487_v5  ;;  %887 = vmatpush.bf16.msrb.mxu3 %v1703_v6 }
 0x1f1   :  { %v489_v9 = vsub.f32 1.5, %v488_v19 }
 0x1f3   :  { %v490_v20 = vmul.f32 %v1764_v17, %v489_v9  ;;  %888 = vmatpush.bf16.msrb.mxu3 %v1702_v16 }
 0x1f5   :  { %v494_v13 = vsel %vm493_vm15, %v1764_v17, %v490_v20 }
 0x1f6   :  { %v496_v21 = vrot.slane %v494_v13, 7 }
 0x1f8   :  { %v498_v22 = vmul.f32 %v496_v21, %v1954_v28 }
 0x1fa   :  { %v500_v23 = vrot.slane %v498_v22, 2 }
 0x1fc   :  { %v502_v24 = vmul.f32 %v500_v23, %v478_v2 }
 0x1fe   :  { %v504_v25 = vrot.slane %v502_v24, 5 }
 0x200   :  { %v506_v26 = vsub.f32 %v1954_v28, %v504_v25 }
 0x202   :  { %v508_v27 = vrot.slane %v506_v26, 2 }
 0x204   :  { %v510_v44 = vsel %vm415_vm12, %v500_v23, %v508_v27 }
 0x205   :  { %512 = vrot.lane.b32.xlu0 %v510_v44, %s1836_s9 }
 0x277   :  { %v513_v43 = vpop.permute.xlu0 %512 }
 0x278   :  { %v516_v47 = vsel %vm515_vm4, %v510_v44, %v513_v43 }
 0x279   :  { %518 = vrot.lane.b32.xlu1 %v516_v47, %s1837_s10 }
 0x2eb   :  { %v519_v51 = vpop.permute.xlu1 %518 }
 0x2ec   :  { %v522_v29 = vsel %vm521_vm5, %v516_v47, %v519_v51 }
 0x2ed   :  { %524 = vrot.lane.b32.xlu2 %v522_v29, %s1823_s0 }
 0x347   :  { %v525_v35 = vpop.permute.xlu2 %524 }
 0x348   :  { %v527_v36 = vsel %vm296_vm2, %v522_v29, %v525_v35 }
 0x349   :  { %529 = vrot.lane.b32.xlu0 %v527_v36, %s1821_s17 }
 0x3bb   :  { %v530_v4 = vpop.permute.xlu0 %529 }
 0x3bc   :  { %v532_v8 = vsel %vm303_vm3, %v527_v36, %v530_v4 }
 0x3bd   :  { %v533_v10 = vperm.slane %v532_v8, 0  ;;  %v539_v12 = vperm.slane %v532_v8, 1 }
 0x3bf   :  { %v534_v2 = vmul.f32 %v533_v10, %v1980_v50  ;;  %v535_v14 = vmul.f32 %v533_v10, %v1976_v11  ;;  %v536_v15 = vmul.f32 %v533_v10, %v1982_v53  ;;  %v537_v58 = vmul.f32 %v533_v10, %v1990_v57 }
 0x3c0   :  { %v538_v17 = vmul.f32 %v533_v10, %v2002_v54 }
 0x3c1   :  { %v542_v18 = vadd.f32 %v539_v12, %v536_v15  ;;  %v543_v5 = vadd.f32 %v539_v12, %v537_v58  ;;  %v540_v19 = vadd.f32 %v539_v12, %v534_v2  ;;  %v541_v9 = vadd.f32 %v539_v12, %v535_v14 }
 0x3c2   :  { %v544_v20 = vadd.f32 %v539_v12, %v538_v17 }
 0x3c3   :  { %v547_v13 = vmax.f32 %v542_v18, 0.0  ;;  %v548_v21 = vmax.f32 %v543_v5, 0.0  ;;  %v545_v22 = vmax.f32 %v540_v19, 0.0  ;;  %v546_v23 = vmax.f32 %v541_v9, 0.0 }
 0x3c4   :  { %v549_v24 = vmax.f32 %v544_v20, 0.0 }
 0x3c5   :  { %v550_v25 = vmul.f32 %v1984_v55, %v545_v22  ;;  %v551_v26 = vmul.f32 %v1978_v46, %v546_v23  ;;  %v552_v27 = vmul.f32 %v1986_v56, %v547_v13  ;;  %v553_v44 = vmul.f32 %v1992_v60, %v548_v21 }
 0x3c6   :  { %v554_v43 = vmul.f32 %v2000_v7, %v549_v24 }
 0x3c7   :  { %v555_v47 = vpack.c.bf16 %v550_v25, %v550_v25  ;;  %v556_v51 = vpack.c.bf16 %v551_v26, %v551_v26  ;;  %v557_v29 = vpack.c.bf16 %v552_v27, %v552_v27  ;;  %v558_v30 = vpack.c.bf16 %v553_v44, %v553_v44 }
 0x3c8   :  { %v559_v31 = vpack.c.bf16 %v554_v43, %v554_v43 }
 0x3c9   :  { %v565_v32 = vunpack.c.l.b16 %v555_v47  ;;  %v566_v33 = vunpack.c.l.b16 %v556_v51  ;;  %v567_v34 = vunpack.c.l.b16 %v557_v29  ;;  %v568_v35 = vunpack.c.l.b16 %v558_v30 }
 0x3ca   :  { %v569_v36 = vunpack.c.l.b16 %v559_v31 }
 0x3cb   :  { %v570_v37 = vpack.c.b16 %v566_v33, %v565_v32  ;;  %v571_v38 = vpack.c.b16 %v568_v35, %v567_v34 }
 0x3cc   :  { %v572_v39 = vpack.c.b16 %v569_v36, %v569_v36 }
 0x3cd   :  { %v575_v40 = vshrl.u32 %v570_v37, 16  ;;  %v582_v41 = vshrl.u32 %v571_v38, 16  ;;  %v578_v48 = vshll.u32 %v570_v37, 16  ;;  %v585_v59 = vshll.u32 %v571_v38, 16 }
 0x3ce   :  { %v590_v42 = vshrl.u32 %v572_v39, 16  ;;  %v593_v52 = vshll.u32 %v572_v39, 16 }
 0x3cf   :  { %v577_v45 = vrot.slane %v575_v40, 7  ;;  %v584_v49 = vrot.slane %v582_v41, 7 }
 0x3d0   :  { %v592_v63 = vrot.slane %v590_v42, 7 }
 0x3d1   :  { %v580_v0 = vor.u32 %v578_v48, %v577_v45  ;;  %v587_v1 = vor.u32 %v585_v59, %v584_v49 }
 0x3d2   :  { %v595_v3 = vor.u32 %v593_v52, %v592_v63 }
 0x3d3   :  { %v602_v4 = vsel %vm2047_vm8, 0, %v580_v0  ;;  %v588_v6 = vsel %vm573_vm6, %v577_v45, %v587_v1 }
 0x3d4   :  { %843 = vmatmul.bf16.vlgmr.msra.gmra.mxu1 %v602_v4  ;;  %v596_v8 = vsel %vm573_vm6, %v584_v49, %v595_v3  ;;  %v658_v10 = vshll.u32 %v602_v4, 16  ;;  %v663_v12 = vshll.u32 %v588_v6, 16  ;;  %v656_v14 = vshrl.u32 %v602_v4, 16 }
 0x3d5   :  { %v606_v2 = vsel %vm2052_vm9, %v596_v8, 0  ;;  %v683_v18 = vrot.slane %v602_v4, 1  ;;  %v684_v5 = vrot.slane %v588_v6, 1  ;;  %v667_v9 = vshrl.u32 %v588_v6, 16 }
 0x3d6   :  { %853 = vmatmul.bf16.vlgmr.msra.gmra.mxu3 %v606_v2  ;;  %v660_v15 = vrot.slane %v658_v10, 1  ;;  %v665_v16 = vrot.slane %v663_v12, 1  ;;  %v671_v19 = vshll.u32 %v606_v2, 16  ;;  %v686_v23 = vrot.slane %v606_v2, 1 }
 0x3d7   :  { %v685_v20 = vsel %vm284_vm1, %v683_v18, %v684_v5  ;;  %v675_v25 = vshrl.u32 %v606_v2, 16 }
 0x3d8   :  { %v661_v58 = vor.u32 %v660_v15, %v656_v14  ;;  %v669_v13 = vor.u32 %v667_v9, %v665_v16  ;;  %v673_v21 = vrot.slane %v671_v19, 1  ;;  %v687_v24 = vsel %vm284_vm1, %v684_v5, %v686_v23 }
 0x3da   :  { %v666_v17 = vsel %vm254_vm0, %v661_v58, %v665_v16  ;;  %v674_v22 = vsel %vm254_vm0, %v669_v13, %v673_v21  ;;  %v677_v26 = vor.u32 %v675_v25, %v673_v21 }
 0x3db   :  { %866 = vmatmul.bf16.vlgmr.msra.gmra.mxu2 %v666_v17 }
 0x3e4   :  { %848 = vmatmul.bf16.gmra.mxu1 %v588_v6 }
 0x3e6   :  { %889 = vmatmul.bf16.vlgmr.msrb.gmra.mxu3 %v685_v20 }
 0x3eb   :  { %871 = vmatmul.bf16.gmra.mxu2 %v674_v22 }
 0x3f6   :  { %894 = vmatmul.bf16.gmra.mxu3 %v687_v24 }
 0x3fb   :  { %876 = vmatmul.bf16.gmra.mxu2 %v677_v26 }
 0x406   :  { %899 = vmatmul.bf16.gmra.mxu3 %v686_v23 }
 0x451   :  { %v844_v47 = vpop.f32.mrf.mxu1 }
 0x459   :  { %v854_v27 = vpop.f32.mrf.mxu3  ;;  %v846_v30 = vpop.f32.mrf.mxu1 }
 0x45e   :  { %v867_v44 = vpop.f32.mrf.mxu2 }
 0x45f   :  { %v868_v38 = vadd.f32 %v867_v44, %v844_v47 }
 0x461   :  { %v856_v43 = vpop.f32.mrf.mxu3  ;;  %v849_v33 = vpop.f32.mrf.mxu1 }
 0x466   :  { %v869_v51 = vpop.f32.mrf.mxu2 }
 0x467   :  { %v870_v36 = vadd.f32 %v869_v51, %v846_v30 }
 0x469   :  { %v890_v29 = vpop.f32.mrf.mxu3  ;;  %v851_v41 = vpop.f32.mrf.mxu1 }
 0x46a   :  { %v2068_v42 = vadd.f32 %v890_v29, %v868_v38 }
 0x46c   :  { %v904_v52 = vmul.f32 %v1984_v55, %v2068_v42 }
 0x46e   :  { %v872_v31 = vpop.f32.mrf.mxu2  ;;  %v920_v8 = vmul.f32 %v904_v52, %v904_v52 }
 0x46f   :  { %v873_v39 = vadd.f32 %v872_v31, %v849_v33 }
 0x471   :  { %v892_v32 = vpop.f32.mrf.mxu3 }
 0x472   :  { %v2066_v40 = vadd.f32 %v892_v32, %v870_v36 }
 0x474   :  { %v905_v59 = vmul.f32 %v1978_v46, %v2066_v40 }
 0x476   :  { %v874_v34 = vpop.f32.mrf.mxu2  ;;  %v921_v3 = vmul.f32 %v905_v59, %v905_v59  ;;  %v909_v10 = vadd.f32 %v905_v59, %v904_v52 }
 0x477   :  { %v875_v45 = vadd.f32 %v874_v34, %v851_v41 }
 0x478   :  { %v925_v15 = vadd.f32 %v921_v3, %v920_v8 }
 0x479   :  { %v895_v35 = vpop.f32.mrf.mxu3 }
 0x47a   :  { %v2070_v48 = vadd.f32 %v895_v35, %v873_v39 }
 0x47c   :  { %v906_v0 = vmul.f32 %v1986_v56, %v2070_v48 }
 0x47e   :  { %v877_v37 = vpop.f32.mrf.mxu2  ;;  %v922_v12 = vmul.f32 %v906_v0, %v906_v0  ;;  %v910_v58 = vadd.f32 %v909_v10, %v906_v0 }
 0x47f   :  { %v878_v6 = vadd.f32 %v877_v37, %v854_v27 }
 0x480   :  { %v926_v18 = vadd.f32 %v925_v15, %v922_v12 }
 0x481   :  { %v897_v49 = vpop.f32.mrf.mxu3 }
 0x482   :  { %v2074_v63 = vadd.f32 %v897_v49, %v875_v45 }
 0x484   :  { %v907_v4 = vmul.f32 %v1992_v60, %v2074_v63 }
 0x486   :  { %v879_v1 = vpop.f32.mrf.mxu2  ;;  %v923_v16 = vmul.f32 %v907_v4, %v907_v4  ;;  %v911_v5 = vadd.f32 %v910_v58, %v907_v4 }
 0x488   :  { %v927_v20 = vadd.f32 %v926_v18, %v923_v16 }
 0x489   :  { %v900_v2 = vpop.f32.mrf.mxu3 }
 0x48a   :  { %v2082_v14 = vadd.f32 %v900_v2, %v878_v6 }
 0x48c   :  { %v908_v17 = vmul.f32 %v2000_v7, %v2082_v14 }
 0x48e   :  { %v912_v19 = vsel %vm390_vm11, %v908_v17, 0.0  ;;  %v924_v9 = vmul.f32 %v908_v17, %v908_v17 }
 0x48f   :  { %v913_v13 = vadd.f32 %v912_v19, %v911_v5 }
 0x490   :  { %v928_v21 = vsel %vm390_vm11, %v924_v9, 0.0 }
 0x491   :  { %v914_v22 = vrot.slane %v913_v13, 4  ;;  %v929_v23 = vadd.f32 %v928_v21, %v927_v20  ;;  %v902_v24 = vpop.f32.mrf.mxu3 }
 0x493   :  { %v915_v25 = vadd.f32 %v914_v22, %v913_v13  ;;  %v930_v26 = vrot.slane %v929_v23, 4 }
 0x495   :  { %v916_v27 = vrot.slane %v915_v25, 2  ;;  %v931_v44 = vadd.f32 %v930_v26, %v929_v23 }
 0x497   :  { %v917_v43 = vadd.f32 %v916_v27, %v915_v25  ;;  %v932_v47 = vrot.slane %v931_v44, 2 }
 0x499   :  { %v918_v51 = vrot.slane %v917_v43, 1  ;;  %v933_v29 = vadd.f32 %v932_v47, %v931_v44 }
 0x49b   :  { %v934_v30 = vrot.slane %v933_v29, 1  ;;  %v919_v31 = vadd.f32 %v918_v51, %v917_v43 }
 0x49d   :  { %v935_v32 = vadd.f32 %v934_v30, %v933_v29 }
 0x49f   :  { %v936_v33 = vsel %vm415_vm12, %v919_v31, %v935_v32 }
 0x4a0   :  { %946 = vrot.lane.b32.xlu0 %v936_v33, %s1826_s26  ;;  %942 = vrot.lane.b32.xlu2 %v936_v33, %s1827_s27 }
 0x4a1   :  { %938 = vrot.lane.b32.xlu1 %v936_v33, %s1828_s28 }
 0x4a8   :  { %958 = vrot.lane.b32.xlu0 %v936_v33, %s1829_s29  ;;  %954 = vrot.lane.b32.xlu2 %v936_v33, %s1830_s30 }
 0x4a9   :  { %950 = vrot.lane.b32.xlu1 %v936_v33, %s1831_s4 }
 0x4b0   :  { %970 = vrot.lane.b32.xlu0 %v936_v33, %s1832_s5  ;;  %966 = vrot.lane.b32.xlu2 %v936_v33, %s1821_s17 }
 0x4b1   :  { %962 = vrot.lane.b32.xlu1 %v936_v33, %s1833_s6 }
 0x4b8   :  { %982 = vrot.lane.b32.xlu0 %v936_v33, %s1823_s0  ;;  %978 = vrot.lane.b32.xlu2 %v936_v33, %s1834_s7 }
 0x4b9   :  { %974 = vrot.lane.b32.xlu1 %v936_v33, %s1835_s8 }
 0x4c0   :  { %994 = vrot.lane.b32.xlu0 %v936_v33, %s1836_s9  ;;  %990 = vrot.lane.b32.xlu2 %v936_v33, %s1837_s10 }
 0x4c1   :  { %986 = vrot.lane.b32.xlu1 %v936_v33, %s1838_s11 }
 0x4fa   :  { %v943_v34 = vpop.permute.xlu2 %942 }
 0x502   :  { %v955_v39 = vpop.permute.xlu2 %954 }
 0x50a   :  { %v967_v0 = vpop.permute.xlu2 %966 }
 0x512   :  { %v947_v35 = vpop.permute.xlu0 %946  ;;  %v979_v12 = vpop.permute.xlu2 %978 }
 0x513   :  { %v939_v36 = vpop.permute.xlu1 %938 }
 0x514   :  { %v941_v37 = vadd.f32 %v939_v36, %v936_v33 }
 0x516   :  { %v945_v38 = vadd.f32 %v943_v34, %v941_v37 }
 0x518   :  { %v949_v45 = vadd.f32 %v947_v35, %v945_v38 }
 0x51a   :  { %v959_v41 = vpop.permute.xlu0 %958  ;;  %v991_v19 = vpop.permute.xlu2 %990 }
 0x51b   :  { %v951_v49 = vpop.permute.xlu1 %950 }
 0x51c   :  { %v953_v59 = vadd.f32 %v951_v49, %v949_v45  ;;  %v1733_v49 = vld [vmem:[#allocation2 + $0x1a8] sm:$0xff] }
 0x51d   :  { %1394 = vmatpush.bf16.msrb.mxu2 %v1733_v49 }
 0x51e   :  { %v957_v52 = vadd.f32 %v955_v39, %v953_v59  ;;  %v1717_v59 = vld [vmem:[#allocation2 + $0x128] sm:$0xff] }
 0x51f   :  { %1348 = vmatpush.bf16.msrb.mxu0 %v1717_v59 }
 0x520   :  { %v961_v1 = vadd.f32 %v959_v41, %v957_v52  ;;  %v1716_v52 = vld [vmem:[#allocation2 + $0x120] sm:$0xff] }
 0x522   :  { %v971_v3 = vpop.permute.xlu0 %970 }
 0x523   :  { %v963_v4 = vpop.permute.xlu1 %962  ;;  %1349 = vmatpush.bf16.msrb.mxu0 %v1716_v52 }
 0x524   :  { %v965_v6 = vadd.f32 %v963_v4, %v961_v1  ;;  %v1715_v1 = vld [vmem:[#allocation2 + $0x118] sm:$0xff] }
 0x526   :  { %v969_v8 = vadd.f32 %v967_v0, %v965_v6  ;;  %v1731_v0 = vld [vmem:[#allocation2 + $0x198] sm:$0xff] }
 0x527   :  { %1350 = vmatpush.bf16.msrb.mxu0 %v1715_v1 }
 0x528   :  { %v973_v10 = vadd.f32 %v971_v3, %v969_v8  ;;  %v1730_v3 = vld [vmem:[#allocation2 + $0x190] sm:$0xff]  ;;  %v1725_v8 = vld [vmem:[#allocation2 + $0x168] sm:$0xff] }
 0x529   :  { %1371 = vmatpush.bf16.msrb.mxu1 %v1725_v8 }
 0x52a   :  { %v983_v58 = vpop.permute.xlu0 %982 }
 0x52b   :  { %v975_v2 = vpop.permute.xlu1 %974 }
 0x52c   :  { %v977_v15 = vadd.f32 %v975_v2, %v973_v10  ;;  %v1724_v10 = vld [vmem:[#allocation2 + $0x160] sm:$0xff]  ;;  %v1723_v2 = vld [vmem:[#allocation2 + $0x158] sm:$0xff] }
 0x52d   :  { %1372 = vmatpush.bf16.msrb.mxu1 %v1724_v10 }
 0x52e   :  { %v981_v16 = vadd.f32 %v979_v12, %v977_v15  ;;  %v1714_v12 = vld [vmem:[#allocation2 + $0x110] sm:$0xff]  ;;  %v1713_v15 = vld [vmem:[#allocation2 + $0x108] sm:$0xff] }
 0x52f   :  { %1351 = vmatpush.bf16.msrb.mxu0 %v1714_v12 }
 0x530   :  { %v985_v17 = vadd.f32 %v983_v58, %v981_v16  ;;  %v1729_v58 = vld [vmem:[#allocation2 + $0x188] sm:$0xff]  ;;  %v1722_v16 = vld [vmem:[#allocation2 + $0x150] sm:$0xff] }
 0x531   :  { %1373 = vmatpush.bf16.msrb.mxu1 %v1723_v2 }
 0x532   :  { %v995_v20 = vpop.permute.xlu0 %994 }
 0x533   :  { %v987_v18 = vpop.permute.xlu1 %986  ;;  %1352 = vmatpush.bf16.msrb.mxu0 %v1713_v15 }
 0x534   :  { %v989_v5 = vadd.f32 %v987_v18, %v985_v17  ;;  %v1712_v17 = vld [vmem:[#allocation2 + $0x100] sm:$0xff] }
 0x535   :  { %1374 = vmatpush.bf16.msrb.mxu1 %v1722_v16  ;;  %v1728_v18 = vld [vmem:[#allocation2 + $0x180] sm:$0xff] }
 0x536   :  { %v993_v9 = vadd.f32 %v991_v19, %v989_v5  ;;  %v1721_v5 = vld [vmem:[#allocation2 + $0x148] sm:$0xff]  ;;  %v1711_v19 = vld [vmem:[#allocation2 + $0xf8] sm:$0xff] }
 0x537   :  { %1353 = vmatpush.bf16.msrb.mxu0 %v1712_v17 }
 0x538   :  { %v997_v13 = vadd.f32 %v995_v20, %v993_v9  ;;  %v1727_v9 = vld [vmem:[#allocation2 + $0x178] sm:$0xff]  ;;  %v1720_v20 = vld [vmem:[#allocation2 + $0x140] sm:$0xff] }
 0x539   :  { %1375 = vmatpush.bf16.msrb.mxu1 %v1721_v5 }
 0x53a   :  { %v998_v21 = vmul.f32 0.001953125, %v997_v13  ;;  %v1710_v13 = vld [vmem:[#allocation2 + $0xf0] sm:$0xff] }
 0x53b   :  { %1354 = vmatpush.bf16.msrb.mxu0 %v1711_v19 }
 0x53c   :  { %v999_v22 = vmul.f32 %v998_v21, %v998_v21 }
 0x53d   :  { %1376 = vmatpush.bf16.msrb.mxu1 %v1720_v20 }
 0x53e   :  { %v1001_v23 = vrot.slane %v999_v22, 7  ;;  %v1719_v22 = vld [vmem:[#allocation2 + $0x138] sm:$0xff] }
 0x53f   :  { %1355 = vmatpush.bf16.msrb.mxu0 %v1710_v13 }
 0x540   :  { %v1003_v24 = vsub.f32 %v998_v21, %v1001_v23  ;;  %v1718_v23 = vld [vmem:[#allocation2 + $0x130] sm:$0xff] }
 0x541   :  { %1377 = vmatpush.bf16.msrb.mxu1 %v1719_v22 }
 0x542   :  { %v1004_v25 = vadd.f32 1e-05, %v1003_v24 }
 0x544   :  { %1765 = vrsqrt.f32 %v1004_v25  ;;  %vm1011_vm11 = vweird.f32 %v1004_v25 }
 0x545   :  { %1378 = vmatpush.bf16.msrb.mxu1 %v1718_v23 }
 0x54a   :  { %v1766_v26 = vpop.eup %1765 }
 0x54b   :  { %v1006_v27 = vmul.f32 %v1766_v26, %v1004_v25  ;;  %vm1012_vm10 = vweird.f32 %v1766_v26 }
 0x54c   :  { %vm1013_vm13 = vmor %vm1011_vm11, %vm1012_vm10 }
 0x54d   :  { %v1007_v44 = vmul.f32 %v1766_v26, %v1006_v27 }
 0x54f   :  { %v1008_v43 = vmul.f32 0.5, %v1007_v44 }
 0x551   :  { %v1009_v47 = vsub.f32 1.5, %v1008_v43 }
 0x553   :  { %v1010_v51 = vmul.f32 %v1766_v26, %v1009_v47 }
 0x555   :  { %v1014_v29 = vsel %vm1013_vm13, %v1766_v26, %v1010_v51 }
 0x556   :  { %v1016_v30 = vrot.slane %v1014_v29, 5 }
 0x558   :  { %v1018_v31 = vmul.f32 %v1016_v30, %v1954_v28 }
 0x55a   :  { %v1020_v32 = vrot.slane %v1018_v31, 4 }
 0x55c   :  { %v1022_v33 = vmul.f32 %v1020_v32, %v998_v21  ;;  %v1726_v21 = vld [vmem:[#allocation2 + $0x170] sm:$0xff] }
 0x55e   :  { %v1024_v34 = vrot.slane %v1022_v33, 3 }
 0x560   :  { %v1026_v35 = vsub.f32 %v1954_v28, %v1024_v34  ;;  %v1732_v28 = vld [vmem:[#allocation2 + $0x1a0] sm:$0xff] }
 0x561   :  { %1395 = vmatpush.bf16.msrb.mxu2 %v1732_v28 }
 0x562   :  { %v1028_v36 = vrot.slane %v1026_v35, 4 }
 0x564   :  { %v1030_v37 = vsel %vm415_vm12, %v1020_v32, %v1028_v36 }
 0x565   :  { %1032 = vrot.lane.b32.xlu1 %v1030_v37, %s1836_s9  ;;  %1396 = vmatpush.bf16.msrb.mxu2 %v1731_v0 }
 0x569   :  { %1397 = vmatpush.bf16.msrb.mxu2 %v1730_v3 }
 0x56d   :  { %1398 = vmatpush.bf16.msrb.mxu2 %v1729_v58 }
 0x571   :  { %1399 = vmatpush.bf16.msrb.mxu2 %v1728_v18 }
 0x575   :  { %1400 = vmatpush.bf16.msrb.mxu2 %v1727_v9 }
 0x579   :  { %1401 = vmatpush.bf16.msrb.mxu2 %v1726_v21 }
 0x5d7   :  { %v1033_v38 = vpop.permute.xlu1 %1032 }
 0x5d8   :  { %v1035_v39 = vsel %vm515_vm4, %v1030_v37, %v1033_v38 }
 0x5d9   :  { %1037 = vrot.lane.b32.xlu2 %v1035_v39, %s1837_s10 }
 0x633   :  { %v1038_v41 = vpop.permute.xlu2 %1037 }
 0x634   :  { %v1040_v45 = vsel %vm521_vm5, %v1035_v39, %v1038_v41 }
 0x635   :  { %1042 = vrot.lane.b32.xlu0 %v1040_v45, %s1823_s0 }
 0x6a7   :  { %v1043_v4 = vpop.permute.xlu0 %1042 }
 0x6a8   :  { %v1045_v6 = vsel %vm296_vm2, %v1040_v45, %v1043_v4 }
 0x6a9   :  { %1047 = vrot.lane.b32.xlu1 %v1045_v6, %s1821_s17  ;;  %s1433_s17 = sshll.u32 %s2150_s3, 4  ;;  %s1434_s17 = int_to_ptr.hbm [resolvable:$true] %s1433_s17 }
 0x71b   :  { %v1048_v24 = vpop.permute.xlu1 %1047 }
 0x71c   :  { %v1050_v25 = vsel %vm303_vm3, %v1045_v6, %v1048_v24 }
 0x71d   :  { %v1051_v26 = vperm.slane %v1050_v25, 0  ;;  %v1057_v27 = vperm.slane %v1050_v25, 1 }
 0x71f   :  { %v1052_v44 = vmul.f32 %v1051_v26, %v2068_v42  ;;  %v1053_v43 = vmul.f32 %v1051_v26, %v2066_v40  ;;  %v1054_v47 = vmul.f32 %v1051_v26, %v2070_v48  ;;  %v1055_v51 = vmul.f32 %v1051_v26, %v2074_v63 }
 0x720   :  { %v1056_v29 = vmul.f32 %v1051_v26, %v2082_v14 }
 0x721   :  { %v1060_v30 = vadd.f32 %v1057_v27, %v1054_v47  ;;  %v1061_v31 = vadd.f32 %v1057_v27, %v1055_v51  ;;  %v1058_v32 = vadd.f32 %v1057_v27, %v1052_v44  ;;  %v1059_v33 = vadd.f32 %v1057_v27, %v1053_v43 }
 0x722   :  { %v1062_v34 = vadd.f32 %v1057_v27, %v1056_v29 }
 0x723   :  { %v1065_v35 = vmax.f32 %v1060_v30, 0.0  ;;  %v1066_v36 = vmax.f32 %v1061_v31, 0.0  ;;  %v1063_v37 = vmax.f32 %v1058_v32, 0.0  ;;  %v1064_v38 = vmax.f32 %v1059_v33, 0.0 }
 0x724   :  { %v1067_v39 = vmax.f32 %v1062_v34, 0.0 }
 0x725   :  { %v1070_v42 = vmul.f32 %v1986_v56, %v1065_v35  ;;  %v1071_v40 = vmul.f32 %v1992_v60, %v1066_v36  ;;  %v1068_v48 = vmul.f32 %v1984_v55, %v1063_v37  ;;  %v1069_v63 = vmul.f32 %v1978_v46, %v1064_v38 }
 0x726   :  { %v1072_v14 = vmul.f32 %v2000_v7, %v1067_v39  ;;  %v1203_v36 = vperm.slane %v1767_v62, 1 }
 0x727   :  { %v1075_v41 = vpack.c.bf16 %v1070_v42, %v1070_v42  ;;  %v1076_v45 = vpack.c.bf16 %v1071_v40, %v1071_v40  ;;  %v1073_v49 = vpack.c.bf16 %v1068_v48, %v1068_v48  ;;  %v1074_v59 = vpack.c.bf16 %v1069_v63, %v1069_v63 }
 0x728   :  { %v1077_v28 = vpack.c.bf16 %v1072_v14, %v1072_v14 }
 0x729   :  { %v1085_v52 = vunpack.c.l.b16 %v1075_v41  ;;  %v1086_v0 = vunpack.c.l.b16 %v1076_v45  ;;  %v1083_v1 = vunpack.c.l.b16 %v1073_v49  ;;  %v1084_v3 = vunpack.c.l.b16 %v1074_v59 }
 0x72a   :  { %v1087_v4 = vunpack.c.l.b16 %v1077_v28 }
 0x72b   :  { %v1088_v6 = vpack.c.b16 %v1084_v3, %v1083_v1  ;;  %v1089_v56 = vpack.c.b16 %v1086_v0, %v1085_v52 }
 0x72c   :  { %v1090_v8 = vpack.c.b16 %v1087_v4, %v1087_v4 }
 0x72d   :  { %v1092_v60 = vshrl.u32 %v1088_v6, 16  ;;  %v1099_v10 = vshrl.u32 %v1089_v56, 16  ;;  %v1095_v12 = vshll.u32 %v1088_v6, 16  ;;  %v1102_v2 = vshll.u32 %v1089_v56, 16 }
 0x72e   :  { %v1107_v7 = vshrl.u32 %v1090_v8, 16  ;;  %v1110_v23 = vshll.u32 %v1090_v8, 16 }
 0x72f   :  { %v1094_v55 = vrot.slane %v1092_v60, 7  ;;  %v1101_v46 = vrot.slane %v1099_v10, 7 }
 0x730   :  { %v1109_v9 = vrot.slane %v1107_v7, 7 }
 0x731   :  { %v1097_v15 = vor.u32 %v1095_v12, %v1094_v55  ;;  %v1104_v58 = vor.u32 %v1102_v2, %v1101_v46 }
 0x732   :  { %v1112_v26 = vor.u32 %v1110_v23, %v1109_v9 }
 0x733   :  { %v1117_v16 = vsel %vm2047_vm8, 0, %v1097_v15  ;;  %v1105_v17 = vsel %vm573_vm6, %v1094_v55, %v1104_v58 }
 0x734   :  { %v1170_v18 = vshll.u32 %v1117_v16, 16  ;;  %1356 = vmatmul.bf16.vlgmr.msrb.gmra.mxu0 %v1117_v16  ;;  %v1195_v5 = vrot.slane %v1117_v16, 1  ;;  %v1196_v19 = vrot.slane %v1105_v17, 1  ;;  %v1175_v20 = vshll.u32 %v1105_v17, 16 }
 0x735   :  { %v1168_v13 = vshrl.u32 %v1117_v16, 16  ;;  %v1113_v27 = vsel %vm573_vm6, %v1101_v46, %v1112_v26  ;;  %v1179_v51 = vshrl.u32 %v1105_v17, 16 }
 0x736   :  { %v1172_v21 = vrot.slane %v1170_v18, 1  ;;  %v1197_v22 = vsel %vm284_vm1, %v1195_v5, %v1196_v19  ;;  %v1177_v25 = vrot.slane %v1175_v20, 1  ;;  %v1118_v44 = vsel %vm2052_vm9, %v1113_v27, 0 }
 0x737   :  { %1402 = vmatmul.bf16.vlgmr.msrb.gmra.mxu2 %v1197_v22  ;;  %v1198_v43 = vrot.slane %v1118_v44, 1  ;;  %v1183_v47 = vshll.u32 %v1118_v44, 16  ;;  %v1187_v33 = vshrl.u32 %v1118_v44, 16 }
 0x738   :  { %v1173_v24 = vor.u32 %v1172_v21, %v1168_v13  ;;  %v1181_v30 = vor.u32 %v1179_v51, %v1177_v25 }
 0x739   :  { %v1199_v29 = vsel %vm284_vm1, %v1196_v19, %v1198_v43  ;;  %v1185_v31 = vrot.slane %v1183_v47, 1 }
 0x73a   :  { %v1178_v61 = vsel %vm254_vm0, %v1173_v24, %v1177_v25 }
 0x73b   :  { %1379 = vmatmul.bf16.vlgmr.msrb.gmra.mxu1 %v1178_v61  ;;  %v1186_v32 = vsel %vm254_vm0, %v1181_v30, %v1185_v31  ;;  %v1189_v34 = vor.u32 %v1187_v33, %v1185_v31 }
 0x744   :  { %1361 = vmatmul.bf16.gmra.mxu0 %v1105_v17 }
 0x747   :  { %1407 = vmatmul.bf16.gmra.mxu2 %v1199_v29 }
 0x74b   :  { %1384 = vmatmul.bf16.gmra.mxu1 %v1186_v32 }
 0x754   :  { %1366 = vmatmul.bf16.gmra.mxu0 %v1118_v44 }
 0x757   :  { %1412 = vmatmul.bf16.gmra.mxu2 %v1198_v43 }
 0x75b   :  { %1389 = vmatmul.bf16.gmra.mxu1 %v1189_v34 }
 0x7b1   :  { %v1357_v35 = vpop.f32.mrf.mxu0 }
 0x7b2   :  { %v1358_v37 = vadd.f32 %v1357_v35, %v1203_v36 }
 0x7b8   :  { %v1380_v38 = vpop.f32.mrf.mxu1 }
 0x7b9   :  { %v1381_v39 = vadd.f32 %v1380_v38, %v1358_v37  ;;  %v1359_v42 = vpop.f32.mrf.mxu0 }
 0x7ba   :  { %v1403_v40 = vpop.f32.mrf.mxu2  ;;  %v1360_v14 = vadd.f32 %v1359_v42, %v1203_v36 }
 0x7bb   :  { %v1404_v48 = vadd.f32 %v1403_v40, %v1381_v39 }
 0x7bd   :  { %v1417_v63 = vadd.f32 %v1404_v48, %v1980_v50 }
 0x7bf   :  { %1422 = vst [vmem:[#allocation5] sm:$0xff] %v1417_v63 }
 0x7c0   :  { %v1382_v41 = vpop.f32.mrf.mxu1 }
 0x7c1   :  { %v1383_v45 = vadd.f32 %v1382_v41, %v1360_v14  ;;  %v1362_v49 = vpop.f32.mrf.mxu0 }
 0x7c2   :  { %v1405_v59 = vpop.f32.mrf.mxu2  ;;  %v1363_v0 = vadd.f32 %v1362_v49, %v1203_v36 }
 0x7c3   :  { %v1406_v28 = vadd.f32 %v1405_v59, %v1383_v45 }
 0x7c5   :  { %v1418_v52 = vadd.f32 %v1406_v28, %v1976_v11 }
 0x7c7   :  { %1423 = vst [vmem:[#allocation5 + $0x8] sm:$0xff] %v1418_v52 }
 0x7c8   :  { %v1385_v1 = vpop.f32.mrf.mxu1 }
 0x7c9   :  { %v1386_v3 = vadd.f32 %v1385_v1, %v1363_v0  ;;  %v1364_v4 = vpop.f32.mrf.mxu0 }
 0x7ca   :  { %v1408_v6 = vpop.f32.mrf.mxu2  ;;  %v1365_v60 = vadd.f32 %v1364_v4, %v1203_v36 }
 0x7cb   :  { %v1409_v56 = vadd.f32 %v1408_v6, %v1386_v3 }
 0x7cd   :  { %v1419_v8 = vadd.f32 %v1409_v56, %v1982_v53 }
 0x7cf   :  { %1424 = vst [vmem:[#allocation5 + $0x10] sm:$0xff] %v1419_v8 }
 0x7d0   :  { %v1387_v50 = vpop.f32.mrf.mxu1 }
 0x7d1   :  { %v1388_v10 = vadd.f32 %v1387_v50, %v1365_v60  ;;  %v1367_v55 = vpop.f32.mrf.mxu0 }
 0x7d2   :  { %v1410_v12 = vpop.f32.mrf.mxu2  ;;  %v1368_v7 = vadd.f32 %v1367_v55, %v1203_v36 }
 0x7d3   :  { %v1411_v46 = vadd.f32 %v1410_v12, %v1388_v10 }
 0x7d5   :  { %v1420_v2 = vadd.f32 %v1411_v46, %v1990_v57 }
 0x7d7   :  { %1425 = vst [vmem:[#allocation5 + $0x18] sm:$0xff] %v1420_v2 }
 0x7d8   :  { %v1390_v11 = vpop.f32.mrf.mxu1 }
 0x7d9   :  { %v1391_v15 = vadd.f32 %v1390_v11, %v1368_v7  ;;  %v1369_v58 = vpop.f32.mrf.mxu0 }
 0x7da   :  { %v1413_v16 = vpop.f32.mrf.mxu2 }
 0x7db   :  { %v1414_v53 = vadd.f32 %v1413_v16, %v1391_v15 }
 0x7dd   :  { %v1421_v17 = vadd.f32 %v1414_v53, %v2002_v54 }
 0x7df   :  { %1426 = vst [vmem:[#allocation5 + $0x20] sm:$0x3] %v1421_v17 }
 0x7e0   :  { %v1392_v18 = vpop.f32.mrf.mxu1  ;;  %1439 = dma.vmem_to_hbm [thread:$0]  %s1432_s14, 640, %s1434_s17, [#allocation4], %s1840_s18, %s1840_s18, %s1836_s9  }
 0x7e2   :  { %v1415_v57 = vpop.f32.mrf.mxu2 }
 0x7e3   :  { %1818 = dma.done.wait [#allocation4], 640  }
 0x7e4   :  { %1819 = vsyncadd [#allocation4], 4294966656 }
 0x7e5   :  { %1444 = vsyncpa [#allocation3], 1 }
 0x7e6   :  { %1445 = vsyncpa [#allocation4], 1 }

</bundles_post_ra>
